<compile_context>
chip_gen: v7x
topology: tpu7x:2x2x1
jax: 0.10.0
libtpu: 0.0.40
codegen_flags: <defaults>
</compile_context>

<pallas_src>
import jax
import jax.numpy as jnp
from jax.experimental import pallas as pl
from jax.experimental.pallas import tpu as pltpu  # noqa: F401  (TPU backend)

# ---------------- small synthetic BERT config ----------------
B, S = 2, 8            # batch, sequence length
HIDDEN = 32            # hidden size
HEADS = 2              # attention heads
HEAD_DIM = HIDDEN // HEADS
INTER = 64             # FFN intermediate size
LAYERS = 2             # transformer layers
VOCAB = 100            # vocab size
MAX_POS = 16           # max position embeddings
NUM_LABELS = 4         # `bert_out` in the PyTorch module
LN_EPS = 1e-12         # BERT LayerNorm eps

_REFS_PER_LAYER = 12   # wqkv,bqkv,wo,bo,ln1_g,ln1_b,w1,b1,w2,b2,ln2_g,ln2_b


# ---------------- fused whole-forward Pallas kernel ----------------
def _layernorm(x, g, b):
    mu = jnp.mean(x, axis=-1, keepdims=True)
    var = jnp.mean((x - mu) ** 2, axis=-1, keepdims=True)
    return (x - mu) * jax.lax.rsqrt(var + LN_EPS) * g + b


def _gelu(y):
    # TODO(synk): HF default hidden_act='gelu' is the exact erf GELU; tanh
    # approximation used here (~1e-3 deviation).
    return 0.5 * y * (1.0 + jnp.tanh(0.7978845608028654 * (y + 0.044715 * y * y * y)))


def _make_bert_kernel(num_layers):
    def kernel(*refs):
        it = iter(refs)
        x_ref = next(it)            # (B*S, HIDDEN)  embeddings (pre-LN)
        mask_ref = next(it)         # (B, S)         additive key-mask bias
        emb_g = next(it)
        emb_b = next(it)
        layers = [tuple(next(it) for _ in range(_REFS_PER_LAYER))
                  for _ in range(num_layers)]
        pool_w = next(it)
        pool_b = next(it)
        cls_w = next(it)
        cls_b = next(it)
        lin_w = next(it)
        lin_b = next(it)
        o_ref = next(it)            # (B, 1)

        # --- embedding LayerNorm (no dummy zero residual) ---
        x = _layernorm(x_ref[...], emb_g[...], emb_b[...])      # (B*S, HIDDEN)
        mask = mask_ref[...]                                     # (B, S)
        scale = 1.0 / float(HEAD_DIM) ** 0.5

        # --- encoder layers, fully unrolled, x stays in vregs/VMEM ---
        for (wqkv, bqkv, wo, bo, l1g, l1b, w1, b1, w2, b2, l2g, l2b) in layers:
            # fused QKV projection: one read of x, one (HIDDEN, 3*HIDDEN) matmul
            qkv = (jnp.dot(x, wqkv[...], preferred_element_type=jnp.float32)
                   + bqkv[...])                                  # (B*S, 3*HIDDEN)

            ctx_rows = []
            for bi in range(B):
                mb = mask[bi:bi + 1, :]                          # (1, S)
                row0 = bi * S
                head_outs = []
                for h in range(HEADS):
                    qo = h * HEAD_DIM
                    ko = HIDDEN + h * HEAD_DIM
                    vo = 2 * HIDDEN + h * HEAD_DIM
                    q = qkv[row0:row0 + S, qo:qo + HEAD_DIM]     # (S, hd)
                    k = qkv[row0:row0 + S, ko:ko + HEAD_DIM]     # (S, hd)
                    v = qkv[row0:row0 + S, vo:vo + HEAD_DIM]     # (S, hd)
                    s = jax.lax.dot_general(
                        q, k, (((1,), (1,)), ((), ())),
                        preferred_element_type=jnp.float32)       # (S, S)
                    s = s * scale + mb                            # mask over keys
                    s = s - jnp.max(s, axis=-1, keepdims=True)
                    p = jnp.exp(s)
                    denom = jnp.sum(p, axis=-1, keepdims=True)
                    p = p * pl.reciprocal(denom, approx=True)     # EUP, off VALU
                    head_outs.append(
                        jnp.dot(p, v, preferred_element_type=jnp.float32))
                ctx_rows.append(jnp.concatenate(head_outs, axis=-1))
            ctx = jnp.concatenate(ctx_rows, axis=0)               # (B*S, HIDDEN)

            # output projection + fused residual-add + LayerNorm
            attn_out = (jnp.dot(ctx, wo[...], preferred_element_type=jnp.float32)
                        + bo[...])
            x = _layernorm(attn_out + x, l1g[...], l1b[...])

            # FFN (w1 -> GELU -> w2) + fused residual-add + LayerNorm
            h1 = _gelu(jnp.dot(x, w1[...], preferred_element_type=jnp.float32)
                       + b1[...])
            ffn = (jnp.dot(h1, w2[...], preferred_element_type=jnp.float32)
                   + b2[...])
            x = _layernorm(ffn + x, l2g[...], l2b[...])

        # --- head: pooler(tanh on [CLS]) -> classifier -> nn.Linear(bert_out,1) ---
        # TODO(synk): HF applies dropout before the classifier; omitted (eval mode).
        cls = jnp.concatenate([x[bi * S:bi * S + 1, :] for bi in range(B)],
                              axis=0)                             # (B, HIDDEN)
        pooled = jnp.tanh(jnp.dot(cls, pool_w[...],
                                  preferred_element_type=jnp.float32) + pool_b[...])
        logits = (jnp.dot(pooled, cls_w[...],
                          preferred_element_type=jnp.float32) + cls_b[...])
        out = (jnp.dot(logits, lin_w[...],
                       preferred_element_type=jnp.float32) + lin_b[...])
        o_ref[...] = out

    return kernel


# ---------------- deterministic parameter init ----------------
def init_params(key):
    def normal(k, shape, scale=0.02):
        return scale * jax.random.normal(k, shape, dtype=jnp.float32)

    keys = iter(jax.random.split(key, 256))
    params = {
        "word_emb": normal(next(keys), (VOCAB, HIDDEN)),
        "pos_emb": normal(next(keys), (MAX_POS, HIDDEN)),
        "type_emb": normal(next(keys), (2, HIDDEN)),
        "emb_ln_g": jnp.ones((HIDDEN,), jnp.float32),
        "emb_ln_b": jnp.zeros((HIDDEN,), jnp.float32),
        "pool_w": normal(next(keys), (HIDDEN, HIDDEN)),
        "pool_b": jnp.zeros((HIDDEN,), jnp.float32),
        "cls_w": normal(next(keys), (HIDDEN, NUM_LABELS)),
        "cls_b": jnp.zeros((NUM_LABELS,), jnp.float32),
        "lin_w": normal(next(keys), (NUM_LABELS, 1)),
        "lin_b": jnp.zeros((1,), jnp.float32),
        "layers": [],
    }
    for _ in range(LAYERS):
        wq = normal(next(keys), (HIDDEN, HIDDEN))
        wk = normal(next(keys), (HIDDEN, HIDDEN))
        wv = normal(next(keys), (HIDDEN, HIDDEN))
        layer = {
            # packed QKV weight/bias -> single matmul, lane-denser output (96)
            "wqkv": jnp.concatenate([wq, wk, wv], axis=1),        # (HIDDEN, 3*HIDDEN)
            "bqkv": jnp.zeros((3 * HIDDEN,), jnp.float32),
            "wo": normal(next(keys), (HIDDEN, HIDDEN)),
            "bo": jnp.zeros((HIDDEN,), jnp.float32),
            "ln1_g": jnp.ones((HIDDEN,), jnp.float32),
            "ln1_b": jnp.zeros((HIDDEN,), jnp.float32),
            "w1": normal(next(keys), (HIDDEN, INTER)),
            "b1": jnp.zeros((INTER,), jnp.float32),
            "w2": normal(next(keys), (INTER, HIDDEN)),
            "b2": jnp.zeros((HIDDEN,), jnp.float32),
            "ln2_g": jnp.ones((HIDDEN,), jnp.float32),
            "ln2_b": jnp.zeros((HIDDEN,), jnp.float32),
        }
        params["layers"].append(layer)
    return params


# ---------------- forward: gather in JAX, everything else in ONE kernel ----------------
def bert_forward(params, b_input_ids, b_input_mask):
    # embeddings (gather stays in plain JAX; token_type_ids=None -> type 0)
    pos_ids = jnp.arange(S)
    x = (params["word_emb"][b_input_ids]
         + params["pos_emb"][pos_ids][None, :, :]
         + params["type_emb"][0][None, None, :])
    x = x.reshape(B * S, HIDDEN).astype(jnp.float32)

    # BERT-style extended attention mask: (1 - mask) * -10000 over key positions
    mask_bias = (1.0 - b_input_mask.astype(jnp.float32)) * -10000.0       # (B, S)

    args = [x, mask_bias,
            params["emb_ln_g"].reshape(1, HIDDEN),
            params["emb_ln_b"].reshape(1, HIDDEN)]
    for layer in params["layers"]:
        args += [layer["wqkv"], layer["bqkv"].reshape(1, 3 * HIDDEN),
                 layer["wo"], layer["bo"].reshape(1, HIDDEN),
                 layer["ln1_g"].reshape(1, HIDDEN), layer["ln1_b"].reshape(1, HIDDEN),
                 layer["w1"], layer["b1"].reshape(1, INTER),
                 layer["w2"], layer["b2"].reshape(1, HIDDEN),
                 layer["ln2_g"].reshape(1, HIDDEN), layer["ln2_b"].reshape(1, HIDDEN)]
    args += [params["pool_w"], params["pool_b"].reshape(1, HIDDEN),
             params["cls_w"], params["cls_b"].reshape(1, NUM_LABELS),
             params["lin_w"], params["lin_b"].reshape(1, 1)]

    # Single pallas_call, no grid: the whole working set (~100 KB) lives in VMEM,
    # so there is no BlockSpec tiling needed at this size.
    return pl.pallas_call(
        _make_bert_kernel(LAYERS),
        out_shape=jax.ShapeDtypeStruct((B, 1), jnp.float32),
    )(*args)


if __name__ == "__main__":
    key = jax.random.PRNGKey(0)
    pkey, ikey = jax.random.split(key)
    params = init_params(pkey)

    b_input_ids = jax.random.randint(ikey, (B, S), 0, VOCAB, dtype=jnp.int32)
    b_input_mask = jnp.ones((B, S), dtype=jnp.int32).at[:, -2:].set(0)    # last 2 tokens padded

    out = jax.jit(bert_forward)(params, b_input_ids, b_input_mask)
    out = jax.block_until_ready(out)
    assert out.shape == (B, 1), out.shape
    print("KERNEL_OK")
</pallas_src>

<mosaic_0001>
module attributes {stable_mosaic.version = 11 : i64} {
  func.func @kernel(%arg0: memref<16x32xf32, #tpu.memory_space<vmem>>, %arg1: memref<2x8xf32, #tpu.memory_space<vmem>>, %arg2: memref<1x32xf32, #tpu.memory_space<vmem>>, %arg3: memref<1x32xf32, #tpu.memory_space<vmem>>, %arg4: memref<32x96xf32, #tpu.memory_space<vmem>>, %arg5: memref<1x96xf32, #tpu.memory_space<vmem>>, %arg6: memref<32x32xf32, #tpu.memory_space<vmem>>, %arg7: memref<1x32xf32, #tpu.memory_space<vmem>>, %arg8: memref<1x32xf32, #tpu.memory_space<vmem>>, %arg9: memref<1x32xf32, #tpu.memory_space<vmem>>, %arg10: memref<32x64xf32, #tpu.memory_space<vmem>>, %arg11: memref<1x64xf32, #tpu.memory_space<vmem>>, %arg12: memref<64x32xf32, #tpu.memory_space<vmem>>, %arg13: memref<1x32xf32, #tpu.memory_space<vmem>>, %arg14: memref<1x32xf32, #tpu.memory_space<vmem>>, %arg15: memref<1x32xf32, #tpu.memory_space<vmem>>, %arg16: memref<32x96xf32, #tpu.memory_space<vmem>>, %arg17: memref<1x96xf32, #tpu.memory_space<vmem>>, %arg18: memref<32x32xf32, #tpu.memory_space<vmem>>, %arg19: memref<1x32xf32, #tpu.memory_space<vmem>>, %arg20: memref<1x32xf32, #tpu.memory_space<vmem>>, %arg21: memref<1x32xf32, #tpu.memory_space<vmem>>, %arg22: memref<32x64xf32, #tpu.memory_space<vmem>>, %arg23: memref<1x64xf32, #tpu.memory_space<vmem>>, %arg24: memref<64x32xf32, #tpu.memory_space<vmem>>, %arg25: memref<1x32xf32, #tpu.memory_space<vmem>>, %arg26: memref<1x32xf32, #tpu.memory_space<vmem>>, %arg27: memref<1x32xf32, #tpu.memory_space<vmem>>, %arg28: memref<32x32xf32, #tpu.memory_space<vmem>>, %arg29: memref<1x32xf32, #tpu.memory_space<vmem>>, %arg30: memref<32x4xf32, #tpu.memory_space<vmem>>, %arg31: memref<1x4xf32, #tpu.memory_space<vmem>>, %arg32: memref<4x1xf32, #tpu.memory_space<vmem>>, %arg33: memref<1x1xf32, #tpu.memory_space<vmem>>, %arg34: memref<2x1xf32, #tpu.memory_space<vmem>>) attributes {dimension_semantics = [], scalar_prefetch = 0 : i64, scratch_operands = 0 : i64, tpu.core_type = #tpu.core_type<tc>} {
    %c0 = arith.constant 0 : index
    %c0_0 = arith.constant 0 : index
    %0 = vector.load %arg0[%c0, %c0_0] : memref<16x32xf32, #tpu.memory_space<vmem>>, vector<16x32xf32>
    %c0_1 = arith.constant 0 : index
    %c0_2 = arith.constant 0 : index
    %1 = vector.load %arg2[%c0_1, %c0_2] : memref<1x32xf32, #tpu.memory_space<vmem>>, vector<1x32xf32>
    %c0_3 = arith.constant 0 : index
    %c0_4 = arith.constant 0 : index
    %2 = vector.load %arg3[%c0_3, %c0_4] : memref<1x32xf32, #tpu.memory_space<vmem>>, vector<1x32xf32>
    %cst = arith.constant dense<0.000000e+00> : vector<16xf32>
    %3 = vector.multi_reduction <add>, %0, %cst [1] : vector<16x32xf32> to vector<16xf32>
    %4 = vector.shape_cast %3 : vector<16xf32> to vector<16x1xf32>
    %cst_5 = arith.constant 3.200000e+01 : f32
    %5 = vector.broadcast %cst_5 : f32 to vector<16x1xf32>
    %6 = arith.divf %4, %5 : vector<16x1xf32>
    %7 = vector.broadcast %6 : vector<16x1xf32> to vector<16x32xf32>
    %8 = arith.subf %0, %7 : vector<16x32xf32>
    %9 = arith.mulf %8, %8 : vector<16x32xf32>
    %cst_6 = arith.constant dense<0.000000e+00> : vector<16xf32>
    %10 = vector.multi_reduction <add>, %9, %cst_6 [1] : vector<16x32xf32> to vector<16xf32>
    %11 = vector.shape_cast %10 : vector<16xf32> to vector<16x1xf32>
    %cst_7 = arith.constant 3.200000e+01 : f32
    %12 = vector.broadcast %cst_7 : f32 to vector<16x1xf32>
    %13 = arith.divf %11, %12 : vector<16x1xf32>
    %14 = vector.broadcast %6 : vector<16x1xf32> to vector<16x32xf32>
    %15 = arith.subf %0, %14 : vector<16x32xf32>
    %cst_8 = arith.constant 9.99999996E-13 : f32
    %16 = vector.broadcast %cst_8 : f32 to vector<16x1xf32>
    %17 = arith.addf %13, %16 : vector<16x1xf32>
    %18 = math.rsqrt %17 : vector<16x1xf32>
    %19 = vector.broadcast %18 : vector<16x1xf32> to vector<16x32xf32>
    %20 = arith.mulf %15, %19 : vector<16x32xf32>
    %21 = vector.broadcast %1 : vector<1x32xf32> to vector<16x32xf32>
    %22 = arith.mulf %20, %21 : vector<16x32xf32>
    %23 = vector.broadcast %2 : vector<1x32xf32> to vector<16x32xf32>
    %24 = arith.addf %22, %23 : vector<16x32xf32>
    %c0_9 = arith.constant 0 : index
    %c0_10 = arith.constant 0 : index
    %25 = vector.load %arg1[%c0_9, %c0_10] : memref<2x8xf32, #tpu.memory_space<vmem>>, vector<2x8xf32>
    %c0_11 = arith.constant 0 : index
    %c0_12 = arith.constant 0 : index
    %26 = vector.load %arg4[%c0_11, %c0_12] : memref<32x96xf32, #tpu.memory_space<vmem>>, vector<32x96xf32>
    %cst_13 = arith.constant dense<0.000000e+00> : vector<16x96xf32>
    %27 = tpu.matmul %24, %26, %cst_13 {dimension_numbers = #tpu.dot_dimension_numbers<[1], [0], [0], [1], [0, 0, 1, 1], [], []>} : vector<16x32xf32>, vector<32x96xf32>, vector<16x96xf32> -> vector<16x96xf32>
    %c0_14 = arith.constant 0 : index
    %c0_15 = arith.constant 0 : index
    %28 = vector.load %arg5[%c0_14, %c0_15] : memref<1x96xf32, #tpu.memory_space<vmem>>, vector<1x96xf32>
    %29 = vector.broadcast %28 : vector<1x96xf32> to vector<16x96xf32>
    %30 = arith.addf %27, %29 : vector<16x96xf32>
    %31 = vector.extract_strided_slice %25 {offsets = [0, 0], sizes = [1, 8], strides = [1, 1]} : vector<2x8xf32> to vector<1x8xf32>
    %32 = vector.extract_strided_slice %30 {offsets = [0, 0], sizes = [8, 16], strides = [1, 1]} : vector<16x96xf32> to vector<8x16xf32>
    %33 = vector.extract_strided_slice %30 {offsets = [0, 32], sizes = [8, 16], strides = [1, 1]} : vector<16x96xf32> to vector<8x16xf32>
    %34 = vector.extract_strided_slice %30 {offsets = [0, 64], sizes = [8, 16], strides = [1, 1]} : vector<16x96xf32> to vector<8x16xf32>
    %cst_16 = arith.constant dense<0.000000e+00> : vector<8x8xf32>
    %35 = tpu.matmul %32, %33, %cst_16 {dimension_numbers = #tpu.dot_dimension_numbers<[1], [1], [0], [0], [0, 0, 1, 0], [], []>} : vector<8x16xf32>, vector<8x16xf32>, vector<8x8xf32> -> vector<8x8xf32>
    %cst_17 = arith.constant 2.500000e-01 : f32
    %36 = vector.broadcast %cst_17 : f32 to vector<8x8xf32>
    %37 = arith.mulf %35, %36 : vector<8x8xf32>
    %38 = vector.broadcast %31 : vector<1x8xf32> to vector<8x8xf32>
    %39 = arith.addf %37, %38 : vector<8x8xf32>
    %cst_18 = arith.constant dense<0xFF800000> : vector<8xf32>
    %40 = vector.multi_reduction <maximumf>, %39, %cst_18 [1] : vector<8x8xf32> to vector<8xf32>
    %41 = vector.shape_cast %40 : vector<8xf32> to vector<8x1xf32>
    %42 = vector.broadcast %41 : vector<8x1xf32> to vector<8x8xf32>
    %43 = arith.subf %39, %42 : vector<8x8xf32>
    %44 = math.exp %43 : vector<8x8xf32>
    %cst_19 = arith.constant dense<0.000000e+00> : vector<8xf32>
    %45 = vector.multi_reduction <add>, %44, %cst_19 [1] : vector<8x8xf32> to vector<8xf32>
    %46 = vector.shape_cast %45 : vector<8xf32> to vector<8x1xf32>
    %47 = tpu.reciprocal %46 {approx = true} : vector<8x1xf32> -> vector<8x1xf32>
    %48 = vector.broadcast %47 : vector<8x1xf32> to vector<8x8xf32>
    %49 = arith.mulf %44, %48 : vector<8x8xf32>
    %cst_20 = arith.constant dense<0.000000e+00> : vector<8x16xf32>
    %50 = tpu.matmul %49, %34, %cst_20 {dimension_numbers = #tpu.dot_dimension_numbers<[1], [0], [0], [1], [0, 0, 1, 1], [], []>} : vector<8x8xf32>, vector<8x16xf32>, vector<8x16xf32> -> vector<8x16xf32>
    %51 = vector.extract_strided_slice %30 {offsets = [0, 16], sizes = [8, 16], strides = [1, 1]} : vector<16x96xf32> to vector<8x16xf32>
    %52 = vector.extract_strided_slice %30 {offsets = [0, 48], sizes = [8, 16], strides = [1, 1]} : vector<16x96xf32> to vector<8x16xf32>
    %53 = vector.extract_strided_slice %30 {offsets = [0, 80], sizes = [8, 16], strides = [1, 1]} : vector<16x96xf32> to vector<8x16xf32>
    %cst_21 = arith.constant dense<0.000000e+00> : vector<8x8xf32>
    %54 = tpu.matmul %51, %52, %cst_21 {dimension_numbers = #tpu.dot_dimension_numbers<[1], [1], [0], [0], [0, 0, 1, 0], [], []>} : vector<8x16xf32>, vector<8x16xf32>, vector<8x8xf32> -> vector<8x8xf32>
    %cst_22 = arith.constant 2.500000e-01 : f32
    %55 = vector.broadcast %cst_22 : f32 to vector<8x8xf32>
    %56 = arith.mulf %54, %55 : vector<8x8xf32>
    %57 = vector.broadcast %31 : vector<1x8xf32> to vector<8x8xf32>
    %58 = arith.addf %56, %57 : vector<8x8xf32>
    %cst_23 = arith.constant dense<0xFF800000> : vector<8xf32>
    %59 = vector.multi_reduction <maximumf>, %58, %cst_23 [1] : vector<8x8xf32> to vector<8xf32>
    %60 = vector.shape_cast %59 : vector<8xf32> to vector<8x1xf32>
    %61 = vector.broadcast %60 : vector<8x1xf32> to vector<8x8xf32>
    %62 = arith.subf %58, %61 : vector<8x8xf32>
    %63 = math.exp %62 : vector<8x8xf32>
    %cst_24 = arith.constant dense<0.000000e+00> : vector<8xf32>
    %64 = vector.multi_reduction <add>, %63, %cst_24 [1] : vector<8x8xf32> to vector<8xf32>
    %65 = vector.shape_cast %64 : vector<8xf32> to vector<8x1xf32>
    %66 = tpu.reciprocal %65 {approx = true} : vector<8x1xf32> -> vector<8x1xf32>
    %67 = vector.broadcast %66 : vector<8x1xf32> to vector<8x8xf32>
    %68 = arith.mulf %63, %67 : vector<8x8xf32>
    %cst_25 = arith.constant dense<0.000000e+00> : vector<8x16xf32>
    %69 = tpu.matmul %68, %53, %cst_25 {dimension_numbers = #tpu.dot_dimension_numbers<[1], [0], [0], [1], [0, 0, 1, 1], [], []>} : vector<8x8xf32>, vector<8x16xf32>, vector<8x16xf32> -> vector<8x16xf32>
    %70 = tpu.concatenate %50, %69 in 1 : vector<8x16xf32>, vector<8x16xf32> -> vector<8x32xf32>
    %71 = vector.extract_strided_slice %25 {offsets = [1, 0], sizes = [1, 8], strides = [1, 1]} : vector<2x8xf32> to vector<1x8xf32>
    %72 = vector.extract_strided_slice %30 {offsets = [8, 0], sizes = [8, 16], strides = [1, 1]} : vector<16x96xf32> to vector<8x16xf32>
    %73 = vector.extract_strided_slice %30 {offsets = [8, 32], sizes = [8, 16], strides = [1, 1]} : vector<16x96xf32> to vector<8x16xf32>
    %74 = vector.extract_strided_slice %30 {offsets = [8, 64], sizes = [8, 16], strides = [1, 1]} : vector<16x96xf32> to vector<8x16xf32>
    %cst_26 = arith.constant dense<0.000000e+00> : vector<8x8xf32>
    %75 = tpu.matmul %72, %73, %cst_26 {dimension_numbers = #tpu.dot_dimension_numbers<[1], [1], [0], [0], [0, 0, 1, 0], [], []>} : vector<8x16xf32>, vector<8x16xf32>, vector<8x8xf32> -> vector<8x8xf32>
    %cst_27 = arith.constant 2.500000e-01 : f32
    %76 = vector.broadcast %cst_27 : f32 to vector<8x8xf32>
    %77 = arith.mulf %75, %76 : vector<8x8xf32>
    %78 = vector.broadcast %71 : vector<1x8xf32> to vector<8x8xf32>
    %79 = arith.addf %77, %78 : vector<8x8xf32>
    %cst_28 = arith.constant dense<0xFF800000> : vector<8xf32>
    %80 = vector.multi_reduction <maximumf>, %79, %cst_28 [1] : vector<8x8xf32> to vector<8xf32>
    %81 = vector.shape_cast %80 : vector<8xf32> to vector<8x1xf32>
    %82 = vector.broadcast %81 : vector<8x1xf32> to vector<8x8xf32>
    %83 = arith.subf %79, %82 : vector<8x8xf32>
    %84 = math.exp %83 : vector<8x8xf32>
    %cst_29 = arith.constant dense<0.000000e+00> : vector<8xf32>
    %85 = vector.multi_reduction <add>, %84, %cst_29 [1] : vector<8x8xf32> to vector<8xf32>
    %86 = vector.shape_cast %85 : vector<8xf32> to vector<8x1xf32>
    %87 = tpu.reciprocal %86 {approx = true} : vector<8x1xf32> -> vector<8x1xf32>
    %88 = vector.broadcast %87 : vector<8x1xf32> to vector<8x8xf32>
    %89 = arith.mulf %84, %88 : vector<8x8xf32>
    %cst_30 = arith.constant dense<0.000000e+00> : vector<8x16xf32>
    %90 = tpu.matmul %89, %74, %cst_30 {dimension_numbers = #tpu.dot_dimension_numbers<[1], [0], [0], [1], [0, 0, 1, 1], [], []>} : vector<8x8xf32>, vector<8x16xf32>, vector<8x16xf32> -> vector<8x16xf32>
    %91 = vector.extract_strided_slice %30 {offsets = [8, 16], sizes = [8, 16], strides = [1, 1]} : vector<16x96xf32> to vector<8x16xf32>
    %92 = vector.extract_strided_slice %30 {offsets = [8, 48], sizes = [8, 16], strides = [1, 1]} : vector<16x96xf32> to vector<8x16xf32>
    %93 = vector.extract_strided_slice %30 {offsets = [8, 80], sizes = [8, 16], strides = [1, 1]} : vector<16x96xf32> to vector<8x16xf32>
    %cst_31 = arith.constant dense<0.000000e+00> : vector<8x8xf32>
    %94 = tpu.matmul %91, %92, %cst_31 {dimension_numbers = #tpu.dot_dimension_numbers<[1], [1], [0], [0], [0, 0, 1, 0], [], []>} : vector<8x16xf32>, vector<8x16xf32>, vector<8x8xf32> -> vector<8x8xf32>
    %cst_32 = arith.constant 2.500000e-01 : f32
    %95 = vector.broadcast %cst_32 : f32 to vector<8x8xf32>
    %96 = arith.mulf %94, %95 : vector<8x8xf32>
    %97 = vector.broadcast %71 : vector<1x8xf32> to vector<8x8xf32>
    %98 = arith.addf %96, %97 : vector<8x8xf32>
    %cst_33 = arith.constant dense<0xFF800000> : vector<8xf32>
    %99 = vector.multi_reduction <maximumf>, %98, %cst_33 [1] : vector<8x8xf32> to vector<8xf32>
    %100 = vector.shape_cast %99 : vector<8xf32> to vector<8x1xf32>
    %101 = vector.broadcast %100 : vector<8x1xf32> to vector<8x8xf32>
    %102 = arith.subf %98, %101 : vector<8x8xf32>
    %103 = math.exp %102 : vector<8x8xf32>
    %cst_34 = arith.constant dense<0.000000e+00> : vector<8xf32>
    %104 = vector.multi_reduction <add>, %103, %cst_34 [1] : vector<8x8xf32> to vector<8xf32>
    %105 = vector.shape_cast %104 : vector<8xf32> to vector<8x1xf32>
    %106 = tpu.reciprocal %105 {approx = true} : vector<8x1xf32> -> vector<8x1xf32>
    %107 = vector.broadcast %106 : vector<8x1xf32> to vector<8x8xf32>
    %108 = arith.mulf %103, %107 : vector<8x8xf32>
    %cst_35 = arith.constant dense<0.000000e+00> : vector<8x16xf32>
    %109 = tpu.matmul %108, %93, %cst_35 {dimension_numbers = #tpu.dot_dimension_numbers<[1], [0], [0], [1], [0, 0, 1, 1], [], []>} : vector<8x8xf32>, vector<8x16xf32>, vector<8x16xf32> -> vector<8x16xf32>
    %110 = tpu.concatenate %90, %109 in 1 : vector<8x16xf32>, vector<8x16xf32> -> vector<8x32xf32>
    %111 = tpu.concatenate %70, %110 in 0 : vector<8x32xf32>, vector<8x32xf32> -> vector<16x32xf32>
    %c0_36 = arith.constant 0 : index
    %c0_37 = arith.constant 0 : index
    %112 = vector.load %arg6[%c0_36, %c0_37] : memref<32x32xf32, #tpu.memory_space<vmem>>, vector<32x32xf32>
    %cst_38 = arith.constant dense<0.000000e+00> : vector<16x32xf32>
    %113 = tpu.matmul %111, %112, %cst_38 {dimension_numbers = #tpu.dot_dimension_numbers<[1], [0], [0], [1], [0, 0, 1, 1], [], []>} : vector<16x32xf32>, vector<32x32xf32>, vector<16x32xf32> -> vector<16x32xf32>
    %c0_39 = arith.constant 0 : index
    %c0_40 = arith.constant 0 : index
    %114 = vector.load %arg7[%c0_39, %c0_40] : memref<1x32xf32, #tpu.memory_space<vmem>>, vector<1x32xf32>
    %115 = vector.broadcast %114 : vector<1x32xf32> to vector<16x32xf32>
    %116 = arith.addf %113, %115 : vector<16x32xf32>
    %117 = arith.addf %116, %24 : vector<16x32xf32>
    %c0_41 = arith.constant 0 : index
    %c0_42 = arith.constant 0 : index
    %118 = vector.load %arg8[%c0_41, %c0_42] : memref<1x32xf32, #tpu.memory_space<vmem>>, vector<1x32xf32>
    %c0_43 = arith.constant 0 : index
    %c0_44 = arith.constant 0 : index
    %119 = vector.load %arg9[%c0_43, %c0_44] : memref<1x32xf32, #tpu.memory_space<vmem>>, vector<1x32xf32>
    %cst_45 = arith.constant dense<0.000000e+00> : vector<16xf32>
    %120 = vector.multi_reduction <add>, %117, %cst_45 [1] : vector<16x32xf32> to vector<16xf32>
    %121 = vector.shape_cast %120 : vector<16xf32> to vector<16x1xf32>
    %cst_46 = arith.constant 3.200000e+01 : f32
    %122 = vector.broadcast %cst_46 : f32 to vector<16x1xf32>
    %123 = arith.divf %121, %122 : vector<16x1xf32>
    %124 = vector.broadcast %123 : vector<16x1xf32> to vector<16x32xf32>
    %125 = arith.subf %117, %124 : vector<16x32xf32>
    %126 = arith.mulf %125, %125 : vector<16x32xf32>
    %cst_47 = arith.constant dense<0.000000e+00> : vector<16xf32>
    %127 = vector.multi_reduction <add>, %126, %cst_47 [1] : vector<16x32xf32> to vector<16xf32>
    %128 = vector.shape_cast %127 : vector<16xf32> to vector<16x1xf32>
    %cst_48 = arith.constant 3.200000e+01 : f32
    %129 = vector.broadcast %cst_48 : f32 to vector<16x1xf32>
    %130 = arith.divf %128, %129 : vector<16x1xf32>
    %131 = vector.broadcast %123 : vector<16x1xf32> to vector<16x32xf32>
    %132 = arith.subf %117, %131 : vector<16x32xf32>
    %cst_49 = arith.constant 9.99999996E-13 : f32
    %133 = vector.broadcast %cst_49 : f32 to vector<16x1xf32>
    %134 = arith.addf %130, %133 : vector<16x1xf32>
    %135 = math.rsqrt %134 : vector<16x1xf32>
    %136 = vector.broadcast %135 : vector<16x1xf32> to vector<16x32xf32>
    %137 = arith.mulf %132, %136 : vector<16x32xf32>
    %138 = vector.broadcast %118 : vector<1x32xf32> to vector<16x32xf32>
    %139 = arith.mulf %137, %138 : vector<16x32xf32>
    %140 = vector.broadcast %119 : vector<1x32xf32> to vector<16x32xf32>
    %141 = arith.addf %139, %140 : vector<16x32xf32>
    %c0_50 = arith.constant 0 : index
    %c0_51 = arith.constant 0 : index
    %142 = vector.load %arg10[%c0_50, %c0_51] : memref<32x64xf32, #tpu.memory_space<vmem>>, vector<32x64xf32>
    %cst_52 = arith.constant dense<0.000000e+00> : vector<16x64xf32>
    %143 = tpu.matmul %141, %142, %cst_52 {dimension_numbers = #tpu.dot_dimension_numbers<[1], [0], [0], [1], [0, 0, 1, 1], [], []>} : vector<16x32xf32>, vector<32x64xf32>, vector<16x64xf32> -> vector<16x64xf32>
    %c0_53 = arith.constant 0 : index
    %c0_54 = arith.constant 0 : index
    %144 = vector.load %arg11[%c0_53, %c0_54] : memref<1x64xf32, #tpu.memory_space<vmem>>, vector<1x64xf32>
    %145 = vector.broadcast %144 : vector<1x64xf32> to vector<16x64xf32>
    %146 = arith.addf %143, %145 : vector<16x64xf32>
    %cst_55 = arith.constant 5.000000e-01 : f32
    %147 = vector.broadcast %cst_55 : f32 to vector<16x64xf32>
    %148 = arith.mulf %147, %146 : vector<16x64xf32>
    %cst_56 = arith.constant 4.471500e-02 : f32
    %149 = vector.broadcast %cst_56 : f32 to vector<16x64xf32>
    %150 = arith.mulf %149, %146 : vector<16x64xf32>
    %151 = arith.mulf %150, %146 : vector<16x64xf32>
    %152 = arith.mulf %151, %146 : vector<16x64xf32>
    %153 = arith.addf %146, %152 : vector<16x64xf32>
    %cst_57 = arith.constant 0.797884583 : f32
    %154 = vector.broadcast %cst_57 : f32 to vector<16x64xf32>
    %155 = arith.mulf %154, %153 : vector<16x64xf32>
    %156 = math.tanh %155 : vector<16x64xf32>
    %cst_58 = arith.constant 1.000000e+00 : f32
    %157 = vector.broadcast %cst_58 : f32 to vector<16x64xf32>
    %158 = arith.addf %157, %156 : vector<16x64xf32>
    %159 = arith.mulf %148, %158 : vector<16x64xf32>
    %c0_59 = arith.constant 0 : index
    %c0_60 = arith.constant 0 : index
    %160 = vector.load %arg12[%c0_59, %c0_60] : memref<64x32xf32, #tpu.memory_space<vmem>>, vector<64x32xf32>
    %cst_61 = arith.constant dense<0.000000e+00> : vector<16x32xf32>
    %161 = tpu.matmul %159, %160, %cst_61 {dimension_numbers = #tpu.dot_dimension_numbers<[1], [0], [0], [1], [0, 0, 1, 1], [], []>} : vector<16x64xf32>, vector<64x32xf32>, vector<16x32xf32> -> vector<16x32xf32>
    %c0_62 = arith.constant 0 : index
    %c0_63 = arith.constant 0 : index
    %162 = vector.load %arg13[%c0_62, %c0_63] : memref<1x32xf32, #tpu.memory_space<vmem>>, vector<1x32xf32>
    %163 = vector.broadcast %162 : vector<1x32xf32> to vector<16x32xf32>
    %164 = arith.addf %161, %163 : vector<16x32xf32>
    %165 = arith.addf %164, %141 : vector<16x32xf32>
    %c0_64 = arith.constant 0 : index
    %c0_65 = arith.constant 0 : index
    %166 = vector.load %arg14[%c0_64, %c0_65] : memref<1x32xf32, #tpu.memory_space<vmem>>, vector<1x32xf32>
    %c0_66 = arith.constant 0 : index
    %c0_67 = arith.constant 0 : index
    %167 = vector.load %arg15[%c0_66, %c0_67] : memref<1x32xf32, #tpu.memory_space<vmem>>, vector<1x32xf32>
    %cst_68 = arith.constant dense<0.000000e+00> : vector<16xf32>
    %168 = vector.multi_reduction <add>, %165, %cst_68 [1] : vector<16x32xf32> to vector<16xf32>
    %169 = vector.shape_cast %168 : vector<16xf32> to vector<16x1xf32>
    %cst_69 = arith.constant 3.200000e+01 : f32
    %170 = vector.broadcast %cst_69 : f32 to vector<16x1xf32>
    %171 = arith.divf %169, %170 : vector<16x1xf32>
    %172 = vector.broadcast %171 : vector<16x1xf32> to vector<16x32xf32>
    %173 = arith.subf %165, %172 : vector<16x32xf32>
    %174 = arith.mulf %173, %173 : vector<16x32xf32>
    %cst_70 = arith.constant dense<0.000000e+00> : vector<16xf32>
    %175 = vector.multi_reduction <add>, %174, %cst_70 [1] : vector<16x32xf32> to vector<16xf32>
    %176 = vector.shape_cast %175 : vector<16xf32> to vector<16x1xf32>
    %cst_71 = arith.constant 3.200000e+01 : f32
    %177 = vector.broadcast %cst_71 : f32 to vector<16x1xf32>
    %178 = arith.divf %176, %177 : vector<16x1xf32>
    %179 = vector.broadcast %171 : vector<16x1xf32> to vector<16x32xf32>
    %180 = arith.subf %165, %179 : vector<16x32xf32>
    %cst_72 = arith.constant 9.99999996E-13 : f32
    %181 = vector.broadcast %cst_72 : f32 to vector<16x1xf32>
    %182 = arith.addf %178, %181 : vector<16x1xf32>
    %183 = math.rsqrt %182 : vector<16x1xf32>
    %184 = vector.broadcast %183 : vector<16x1xf32> to vector<16x32xf32>
    %185 = arith.mulf %180, %184 : vector<16x32xf32>
    %186 = vector.broadcast %166 : vector<1x32xf32> to vector<16x32xf32>
    %187 = arith.mulf %185, %186 : vector<16x32xf32>
    %188 = vector.broadcast %167 : vector<1x32xf32> to vector<16x32xf32>
    %189 = arith.addf %187, %188 : vector<16x32xf32>
    %c0_73 = arith.constant 0 : index
    %c0_74 = arith.constant 0 : index
    %190 = vector.load %arg16[%c0_73, %c0_74] : memref<32x96xf32, #tpu.memory_space<vmem>>, vector<32x96xf32>
    %cst_75 = arith.constant dense<0.000000e+00> : vector<16x96xf32>
    %191 = tpu.matmul %189, %190, %cst_75 {dimension_numbers = #tpu.dot_dimension_numbers<[1], [0], [0], [1], [0, 0, 1, 1], [], []>} : vector<16x32xf32>, vector<32x96xf32>, vector<16x96xf32> -> vector<16x96xf32>
    %c0_76 = arith.constant 0 : index
    %c0_77 = arith.constant 0 : index
    %192 = vector.load %arg17[%c0_76, %c0_77] : memref<1x96xf32, #tpu.memory_space<vmem>>, vector<1x96xf32>
    %193 = vector.broadcast %192 : vector<1x96xf32> to vector<16x96xf32>
    %194 = arith.addf %191, %193 : vector<16x96xf32>
    %195 = vector.extract_strided_slice %25 {offsets = [0, 0], sizes = [1, 8], strides = [1, 1]} : vector<2x8xf32> to vector<1x8xf32>
    %196 = vector.extract_strided_slice %194 {offsets = [0, 0], sizes = [8, 16], strides = [1, 1]} : vector<16x96xf32> to vector<8x16xf32>
    %197 = vector.extract_strided_slice %194 {offsets = [0, 32], sizes = [8, 16], strides = [1, 1]} : vector<16x96xf32> to vector<8x16xf32>
    %198 = vector.extract_strided_slice %194 {offsets = [0, 64], sizes = [8, 16], strides = [1, 1]} : vector<16x96xf32> to vector<8x16xf32>
    %cst_78 = arith.constant dense<0.000000e+00> : vector<8x8xf32>
    %199 = tpu.matmul %196, %197, %cst_78 {dimension_numbers = #tpu.dot_dimension_numbers<[1], [1], [0], [0], [0, 0, 1, 0], [], []>} : vector<8x16xf32>, vector<8x16xf32>, vector<8x8xf32> -> vector<8x8xf32>
    %cst_79 = arith.constant 2.500000e-01 : f32
    %200 = vector.broadcast %cst_79 : f32 to vector<8x8xf32>
    %201 = arith.mulf %199, %200 : vector<8x8xf32>
    %202 = vector.broadcast %195 : vector<1x8xf32> to vector<8x8xf32>
    %203 = arith.addf %201, %202 : vector<8x8xf32>
    %cst_80 = arith.constant dense<0xFF800000> : vector<8xf32>
    %204 = vector.multi_reduction <maximumf>, %203, %cst_80 [1] : vector<8x8xf32> to vector<8xf32>
    %205 = vector.shape_cast %204 : vector<8xf32> to vector<8x1xf32>
    %206 = vector.broadcast %205 : vector<8x1xf32> to vector<8x8xf32>
    %207 = arith.subf %203, %206 : vector<8x8xf32>
    %208 = math.exp %207 : vector<8x8xf32>
    %cst_81 = arith.constant dense<0.000000e+00> : vector<8xf32>
    %209 = vector.multi_reduction <add>, %208, %cst_81 [1] : vector<8x8xf32> to vector<8xf32>
    %210 = vector.shape_cast %209 : vector<8xf32> to vector<8x1xf32>
    %211 = tpu.reciprocal %210 {approx = true} : vector<8x1xf32> -> vector<8x1xf32>
    %212 = vector.broadcast %211 : vector<8x1xf32> to vector<8x8xf32>
    %213 = arith.mulf %208, %212 : vector<8x8xf32>
    %cst_82 = arith.constant dense<0.000000e+00> : vector<8x16xf32>
    %214 = tpu.matmul %213, %198, %cst_82 {dimension_numbers = #tpu.dot_dimension_numbers<[1], [0], [0], [1], [0, 0, 1, 1], [], []>} : vector<8x8xf32>, vector<8x16xf32>, vector<8x16xf32> -> vector<8x16xf32>
    %215 = vector.extract_strided_slice %194 {offsets = [0, 16], sizes = [8, 16], strides = [1, 1]} : vector<16x96xf32> to vector<8x16xf32>
    %216 = vector.extract_strided_slice %194 {offsets = [0, 48], sizes = [8, 16], strides = [1, 1]} : vector<16x96xf32> to vector<8x16xf32>
    %217 = vector.extract_strided_slice %194 {offsets = [0, 80], sizes = [8, 16], strides = [1, 1]} : vector<16x96xf32> to vector<8x16xf32>
    %cst_83 = arith.constant dense<0.000000e+00> : vector<8x8xf32>
    %218 = tpu.matmul %215, %216, %cst_83 {dimension_numbers = #tpu.dot_dimension_numbers<[1], [1], [0], [0], [0, 0, 1, 0], [], []>} : vector<8x16xf32>, vector<8x16xf32>, vector<8x8xf32> -> vector<8x8xf32>
    %cst_84 = arith.constant 2.500000e-01 : f32
    %219 = vector.broadcast %cst_84 : f32 to vector<8x8xf32>
    %220 = arith.mulf %218, %219 : vector<8x8xf32>
    %221 = vector.broadcast %195 : vector<1x8xf32> to vector<8x8xf32>
    %222 = arith.addf %220, %221 : vector<8x8xf32>
    %cst_85 = arith.constant dense<0xFF800000> : vector<8xf32>
    %223 = vector.multi_reduction <maximumf>, %222, %cst_85 [1] : vector<8x8xf32> to vector<8xf32>
    %224 = vector.shape_cast %223 : vector<8xf32> to vector<8x1xf32>
    %225 = vector.broadcast %224 : vector<8x1xf32> to vector<8x8xf32>
    %226 = arith.subf %222, %225 : vector<8x8xf32>
    %227 = math.exp %226 : vector<8x8xf32>
    %cst_86 = arith.constant dense<0.000000e+00> : vector<8xf32>
    %228 = vector.multi_reduction <add>, %227, %cst_86 [1] : vector<8x8xf32> to vector<8xf32>
    %229 = vector.shape_cast %228 : vector<8xf32> to vector<8x1xf32>
    %230 = tpu.reciprocal %229 {approx = true} : vector<8x1xf32> -> vector<8x1xf32>
    %231 = vector.broadcast %230 : vector<8x1xf32> to vector<8x8xf32>
    %232 = arith.mulf %227, %231 : vector<8x8xf32>
    %cst_87 = arith.constant dense<0.000000e+00> : vector<8x16xf32>
    %233 = tpu.matmul %232, %217, %cst_87 {dimension_numbers = #tpu.dot_dimension_numbers<[1], [0], [0], [1], [0, 0, 1, 1], [], []>} : vector<8x8xf32>, vector<8x16xf32>, vector<8x16xf32> -> vector<8x16xf32>
    %234 = tpu.concatenate %214, %233 in 1 : vector<8x16xf32>, vector<8x16xf32> -> vector<8x32xf32>
    %235 = vector.extract_strided_slice %25 {offsets = [1, 0], sizes = [1, 8], strides = [1, 1]} : vector<2x8xf32> to vector<1x8xf32>
    %236 = vector.extract_strided_slice %194 {offsets = [8, 0], sizes = [8, 16], strides = [1, 1]} : vector<16x96xf32> to vector<8x16xf32>
    %237 = vector.extract_strided_slice %194 {offsets = [8, 32], sizes = [8, 16], strides = [1, 1]} : vector<16x96xf32> to vector<8x16xf32>
    %238 = vector.extract_strided_slice %194 {offsets = [8, 64], sizes = [8, 16], strides = [1, 1]} : vector<16x96xf32> to vector<8x16xf32>
    %cst_88 = arith.constant dense<0.000000e+00> : vector<8x8xf32>
    %239 = tpu.matmul %236, %237, %cst_88 {dimension_numbers = #tpu.dot_dimension_numbers<[1], [1], [0], [0], [0, 0, 1, 0], [], []>} : vector<8x16xf32>, vector<8x16xf32>, vector<8x8xf32> -> vector<8x8xf32>
    %cst_89 = arith.constant 2.500000e-01 : f32
    %240 = vector.broadcast %cst_89 : f32 to vector<8x8xf32>
    %241 = arith.mulf %239, %240 : vector<8x8xf32>
    %242 = vector.broadcast %235 : vector<1x8xf32> to vector<8x8xf32>
    %243 = arith.addf %241, %242 : vector<8x8xf32>
    %cst_90 = arith.constant dense<0xFF800000> : vector<8xf32>
    %244 = vector.multi_reduction <maximumf>, %243, %cst_90 [1] : vector<8x8xf32> to vector<8xf32>
    %245 = vector.shape_cast %244 : vector<8xf32> to vector<8x1xf32>
    %246 = vector.broadcast %245 : vector<8x1xf32> to vector<8x8xf32>
    %247 = arith.subf %243, %246 : vector<8x8xf32>
    %248 = math.exp %247 : vector<8x8xf32>
    %cst_91 = arith.constant dense<0.000000e+00> : vector<8xf32>
    %249 = vector.multi_reduction <add>, %248, %cst_91 [1] : vector<8x8xf32> to vector<8xf32>
    %250 = vector.shape_cast %249 : vector<8xf32> to vector<8x1xf32>
    %251 = tpu.reciprocal %250 {approx = true} : vector<8x1xf32> -> vector<8x1xf32>
    %252 = vector.broadcast %251 : vector<8x1xf32> to vector<8x8xf32>
    %253 = arith.mulf %248, %252 : vector<8x8xf32>
    %cst_92 = arith.constant dense<0.000000e+00> : vector<8x16xf32>
    %254 = tpu.matmul %253, %238, %cst_92 {dimension_numbers = #tpu.dot_dimension_numbers<[1], [0], [0], [1], [0, 0, 1, 1], [], []>} : vector<8x8xf32>, vector<8x16xf32>, vector<8x16xf32> -> vector<8x16xf32>
    %255 = vector.extract_strided_slice %194 {offsets = [8, 16], sizes = [8, 16], strides = [1, 1]} : vector<16x96xf32> to vector<8x16xf32>
    %256 = vector.extract_strided_slice %194 {offsets = [8, 48], sizes = [8, 16], strides = [1, 1]} : vector<16x96xf32> to vector<8x16xf32>
    %257 = vector.extract_strided_slice %194 {offsets = [8, 80], sizes = [8, 16], strides = [1, 1]} : vector<16x96xf32> to vector<8x16xf32>
    %cst_93 = arith.constant dense<0.000000e+00> : vector<8x8xf32>
    %258 = tpu.matmul %255, %256, %cst_93 {dimension_numbers = #tpu.dot_dimension_numbers<[1], [1], [0], [0], [0, 0, 1, 0], [], []>} : vector<8x16xf32>, vector<8x16xf32>, vector<8x8xf32> -> vector<8x8xf32>
    %cst_94 = arith.constant 2.500000e-01 : f32
    %259 = vector.broadcast %cst_94 : f32 to vector<8x8xf32>
    %260 = arith.mulf %258, %259 : vector<8x8xf32>
    %261 = vector.broadcast %235 : vector<1x8xf32> to vector<8x8xf32>
    %262 = arith.addf %260, %261 : vector<8x8xf32>
    %cst_95 = arith.constant dense<0xFF800000> : vector<8xf32>
    %263 = vector.multi_reduction <maximumf>, %262, %cst_95 [1] : vector<8x8xf32> to vector<8xf32>
    %264 = vector.shape_cast %263 : vector<8xf32> to vector<8x1xf32>
    %265 = vector.broadcast %264 : vector<8x1xf32> to vector<8x8xf32>
    %266 = arith.subf %262, %265 : vector<8x8xf32>
    %267 = math.exp %266 : vector<8x8xf32>
    %cst_96 = arith.constant dense<0.000000e+00> : vector<8xf32>
    %268 = vector.multi_reduction <add>, %267, %cst_96 [1] : vector<8x8xf32> to vector<8xf32>
    %269 = vector.shape_cast %268 : vector<8xf32> to vector<8x1xf32>
    %270 = tpu.reciprocal %269 {approx = true} : vector<8x1xf32> -> vector<8x1xf32>
    %271 = vector.broadcast %270 : vector<8x1xf32> to vector<8x8xf32>
    %272 = arith.mulf %267, %271 : vector<8x8xf32>
    %cst_97 = arith.constant dense<0.000000e+00> : vector<8x16xf32>
    %273 = tpu.matmul %272, %257, %cst_97 {dimension_numbers = #tpu.dot_dimension_numbers<[1], [0], [0], [1], [0, 0, 1, 1], [], []>} : vector<8x8xf32>, vector<8x16xf32>, vector<8x16xf32> -> vector<8x16xf32>
    %274 = tpu.concatenate %254, %273 in 1 : vector<8x16xf32>, vector<8x16xf32> -> vector<8x32xf32>
    %275 = tpu.concatenate %234, %274 in 0 : vector<8x32xf32>, vector<8x32xf32> -> vector<16x32xf32>
    %c0_98 = arith.constant 0 : index
    %c0_99 = arith.constant 0 : index
    %276 = vector.load %arg18[%c0_98, %c0_99] : memref<32x32xf32, #tpu.memory_space<vmem>>, vector<32x32xf32>
    %cst_100 = arith.constant dense<0.000000e+00> : vector<16x32xf32>
    %277 = tpu.matmul %275, %276, %cst_100 {dimension_numbers = #tpu.dot_dimension_numbers<[1], [0], [0], [1], [0, 0, 1, 1], [], []>} : vector<16x32xf32>, vector<32x32xf32>, vector<16x32xf32> -> vector<16x32xf32>
    %c0_101 = arith.constant 0 : index
    %c0_102 = arith.constant 0 : index
    %278 = vector.load %arg19[%c0_101, %c0_102] : memref<1x32xf32, #tpu.memory_space<vmem>>, vector<1x32xf32>
    %279 = vector.broadcast %278 : vector<1x32xf32> to vector<16x32xf32>
    %280 = arith.addf %277, %279 : vector<16x32xf32>
    %281 = arith.addf %280, %189 : vector<16x32xf32>
    %c0_103 = arith.constant 0 : index
    %c0_104 = arith.constant 0 : index
    %282 = vector.load %arg20[%c0_103, %c0_104] : memref<1x32xf32, #tpu.memory_space<vmem>>, vector<1x32xf32>
    %c0_105 = arith.constant 0 : index
    %c0_106 = arith.constant 0 : index
    %283 = vector.load %arg21[%c0_105, %c0_106] : memref<1x32xf32, #tpu.memory_space<vmem>>, vector<1x32xf32>
    %cst_107 = arith.constant dense<0.000000e+00> : vector<16xf32>
    %284 = vector.multi_reduction <add>, %281, %cst_107 [1] : vector<16x32xf32> to vector<16xf32>
    %285 = vector.shape_cast %284 : vector<16xf32> to vector<16x1xf32>
    %cst_108 = arith.constant 3.200000e+01 : f32
    %286 = vector.broadcast %cst_108 : f32 to vector<16x1xf32>
    %287 = arith.divf %285, %286 : vector<16x1xf32>
    %288 = vector.broadcast %287 : vector<16x1xf32> to vector<16x32xf32>
    %289 = arith.subf %281, %288 : vector<16x32xf32>
    %290 = arith.mulf %289, %289 : vector<16x32xf32>
    %cst_109 = arith.constant dense<0.000000e+00> : vector<16xf32>
    %291 = vector.multi_reduction <add>, %290, %cst_109 [1] : vector<16x32xf32> to vector<16xf32>
    %292 = vector.shape_cast %291 : vector<16xf32> to vector<16x1xf32>
    %cst_110 = arith.constant 3.200000e+01 : f32
    %293 = vector.broadcast %cst_110 : f32 to vector<16x1xf32>
    %294 = arith.divf %292, %293 : vector<16x1xf32>
    %295 = vector.broadcast %287 : vector<16x1xf32> to vector<16x32xf32>
    %296 = arith.subf %281, %295 : vector<16x32xf32>
    %cst_111 = arith.constant 9.99999996E-13 : f32
    %297 = vector.broadcast %cst_111 : f32 to vector<16x1xf32>
    %298 = arith.addf %294, %297 : vector<16x1xf32>
    %299 = math.rsqrt %298 : vector<16x1xf32>
    %300 = vector.broadcast %299 : vector<16x1xf32> to vector<16x32xf32>
    %301 = arith.mulf %296, %300 : vector<16x32xf32>
    %302 = vector.broadcast %282 : vector<1x32xf32> to vector<16x32xf32>
    %303 = arith.mulf %301, %302 : vector<16x32xf32>
    %304 = vector.broadcast %283 : vector<1x32xf32> to vector<16x32xf32>
    %305 = arith.addf %303, %304 : vector<16x32xf32>
    %c0_112 = arith.constant 0 : index
    %c0_113 = arith.constant 0 : index
    %306 = vector.load %arg22[%c0_112, %c0_113] : memref<32x64xf32, #tpu.memory_space<vmem>>, vector<32x64xf32>
    %cst_114 = arith.constant dense<0.000000e+00> : vector<16x64xf32>
    %307 = tpu.matmul %305, %306, %cst_114 {dimension_numbers = #tpu.dot_dimension_numbers<[1], [0], [0], [1], [0, 0, 1, 1], [], []>} : vector<16x32xf32>, vector<32x64xf32>, vector<16x64xf32> -> vector<16x64xf32>
    %c0_115 = arith.constant 0 : index
    %c0_116 = arith.constant 0 : index
    %308 = vector.load %arg23[%c0_115, %c0_116] : memref<1x64xf32, #tpu.memory_space<vmem>>, vector<1x64xf32>
    %309 = vector.broadcast %308 : vector<1x64xf32> to vector<16x64xf32>
    %310 = arith.addf %307, %309 : vector<16x64xf32>
    %cst_117 = arith.constant 5.000000e-01 : f32
    %311 = vector.broadcast %cst_117 : f32 to vector<16x64xf32>
    %312 = arith.mulf %311, %310 : vector<16x64xf32>
    %cst_118 = arith.constant 4.471500e-02 : f32
    %313 = vector.broadcast %cst_118 : f32 to vector<16x64xf32>
    %314 = arith.mulf %313, %310 : vector<16x64xf32>
    %315 = arith.mulf %314, %310 : vector<16x64xf32>
    %316 = arith.mulf %315, %310 : vector<16x64xf32>
    %317 = arith.addf %310, %316 : vector<16x64xf32>
    %cst_119 = arith.constant 0.797884583 : f32
    %318 = vector.broadcast %cst_119 : f32 to vector<16x64xf32>
    %319 = arith.mulf %318, %317 : vector<16x64xf32>
    %320 = math.tanh %319 : vector<16x64xf32>
    %cst_120 = arith.constant 1.000000e+00 : f32
    %321 = vector.broadcast %cst_120 : f32 to vector<16x64xf32>
    %322 = arith.addf %321, %320 : vector<16x64xf32>
    %323 = arith.mulf %312, %322 : vector<16x64xf32>
    %c0_121 = arith.constant 0 : index
    %c0_122 = arith.constant 0 : index
    %324 = vector.load %arg24[%c0_121, %c0_122] : memref<64x32xf32, #tpu.memory_space<vmem>>, vector<64x32xf32>
    %cst_123 = arith.constant dense<0.000000e+00> : vector<16x32xf32>
    %325 = tpu.matmul %323, %324, %cst_123 {dimension_numbers = #tpu.dot_dimension_numbers<[1], [0], [0], [1], [0, 0, 1, 1], [], []>} : vector<16x64xf32>, vector<64x32xf32>, vector<16x32xf32> -> vector<16x32xf32>
    %c0_124 = arith.constant 0 : index
    %c0_125 = arith.constant 0 : index
    %326 = vector.load %arg25[%c0_124, %c0_125] : memref<1x32xf32, #tpu.memory_space<vmem>>, vector<1x32xf32>
    %327 = vector.broadcast %326 : vector<1x32xf32> to vector<16x32xf32>
    %328 = arith.addf %325, %327 : vector<16x32xf32>
    %329 = arith.addf %328, %305 : vector<16x32xf32>
    %c0_126 = arith.constant 0 : index
    %c0_127 = arith.constant 0 : index
    %330 = vector.load %arg26[%c0_126, %c0_127] : memref<1x32xf32, #tpu.memory_space<vmem>>, vector<1x32xf32>
    %c0_128 = arith.constant 0 : index
    %c0_129 = arith.constant 0 : index
    %331 = vector.load %arg27[%c0_128, %c0_129] : memref<1x32xf32, #tpu.memory_space<vmem>>, vector<1x32xf32>
    %cst_130 = arith.constant dense<0.000000e+00> : vector<16xf32>
    %332 = vector.multi_reduction <add>, %329, %cst_130 [1] : vector<16x32xf32> to vector<16xf32>
    %333 = vector.shape_cast %332 : vector<16xf32> to vector<16x1xf32>
    %cst_131 = arith.constant 3.200000e+01 : f32
    %334 = vector.broadcast %cst_131 : f32 to vector<16x1xf32>
    %335 = arith.divf %333, %334 : vector<16x1xf32>
    %336 = vector.broadcast %335 : vector<16x1xf32> to vector<16x32xf32>
    %337 = arith.subf %329, %336 : vector<16x32xf32>
    %338 = arith.mulf %337, %337 : vector<16x32xf32>
    %cst_132 = arith.constant dense<0.000000e+00> : vector<16xf32>
    %339 = vector.multi_reduction <add>, %338, %cst_132 [1] : vector<16x32xf32> to vector<16xf32>
    %340 = vector.shape_cast %339 : vector<16xf32> to vector<16x1xf32>
    %cst_133 = arith.constant 3.200000e+01 : f32
    %341 = vector.broadcast %cst_133 : f32 to vector<16x1xf32>
    %342 = arith.divf %340, %341 : vector<16x1xf32>
    %343 = vector.broadcast %335 : vector<16x1xf32> to vector<16x32xf32>
    %344 = arith.subf %329, %343 : vector<16x32xf32>
    %cst_134 = arith.constant 9.99999996E-13 : f32
    %345 = vector.broadcast %cst_134 : f32 to vector<16x1xf32>
    %346 = arith.addf %342, %345 : vector<16x1xf32>
    %347 = math.rsqrt %346 : vector<16x1xf32>
    %348 = vector.broadcast %347 : vector<16x1xf32> to vector<16x32xf32>
    %349 = arith.mulf %344, %348 : vector<16x32xf32>
    %350 = vector.broadcast %330 : vector<1x32xf32> to vector<16x32xf32>
    %351 = arith.mulf %349, %350 : vector<16x32xf32>
    %352 = vector.broadcast %331 : vector<1x32xf32> to vector<16x32xf32>
    %353 = arith.addf %351, %352 : vector<16x32xf32>
    %354 = vector.extract_strided_slice %353 {offsets = [0, 0], sizes = [1, 32], strides = [1, 1]} : vector<16x32xf32> to vector<1x32xf32>
    %355 = vector.extract_strided_slice %353 {offsets = [8, 0], sizes = [1, 32], strides = [1, 1]} : vector<16x32xf32> to vector<1x32xf32>
    %356 = tpu.concatenate %354, %355 in 0 : vector<1x32xf32>, vector<1x32xf32> -> vector<2x32xf32>
    %c0_135 = arith.constant 0 : index
    %c0_136 = arith.constant 0 : index
    %357 = vector.load %arg28[%c0_135, %c0_136] : memref<32x32xf32, #tpu.memory_space<vmem>>, vector<32x32xf32>
    %cst_137 = arith.constant dense<0.000000e+00> : vector<2x32xf32>
    %358 = tpu.matmul %356, %357, %cst_137 {dimension_numbers = #tpu.dot_dimension_numbers<[1], [0], [0], [1], [0, 0, 1, 1], [], []>} : vector<2x32xf32>, vector<32x32xf32>, vector<2x32xf32> -> vector<2x32xf32>
    %c0_138 = arith.constant 0 : index
    %c0_139 = arith.constant 0 : index
    %359 = vector.load %arg29[%c0_138, %c0_139] : memref<1x32xf32, #tpu.memory_space<vmem>>, vector<1x32xf32>
    %360 = vector.broadcast %359 : vector<1x32xf32> to vector<2x32xf32>
    %361 = arith.addf %358, %360 : vector<2x32xf32>
    %362 = math.tanh %361 : vector<2x32xf32>
    %c0_140 = arith.constant 0 : index
    %c0_141 = arith.constant 0 : index
    %363 = vector.load %arg30[%c0_140, %c0_141] : memref<32x4xf32, #tpu.memory_space<vmem>>, vector<32x4xf32>
    %cst_142 = arith.constant dense<0.000000e+00> : vector<2x4xf32>
    %364 = tpu.matmul %362, %363, %cst_142 {dimension_numbers = #tpu.dot_dimension_numbers<[1], [0], [0], [1], [0, 0, 1, 1], [], []>} : vector<2x32xf32>, vector<32x4xf32>, vector<2x4xf32> -> vector<2x4xf32>
    %c0_143 = arith.constant 0 : index
    %c0_144 = arith.constant 0 : index
    %365 = vector.load %arg31[%c0_143, %c0_144] : memref<1x4xf32, #tpu.memory_space<vmem>>, vector<1x4xf32>
    %366 = vector.broadcast %365 : vector<1x4xf32> to vector<2x4xf32>
    %367 = arith.addf %364, %366 : vector<2x4xf32>
    %c0_145 = arith.constant 0 : index
    %c0_146 = arith.constant 0 : index
    %368 = vector.load %arg32[%c0_145, %c0_146] : memref<4x1xf32, #tpu.memory_space<vmem>>, vector<4x1xf32>
    %cst_147 = arith.constant dense<0.000000e+00> : vector<2x1xf32>
    %369 = tpu.matmul %367, %368, %cst_147 {dimension_numbers = #tpu.dot_dimension_numbers<[1], [0], [0], [1], [0, 0, 1, 1], [], []>} : vector<2x4xf32>, vector<4x1xf32>, vector<2x1xf32> -> vector<2x1xf32>
    %c0_148 = arith.constant 0 : index
    %c0_149 = arith.constant 0 : index
    %370 = vector.load %arg33[%c0_148, %c0_149] : memref<1x1xf32, #tpu.memory_space<vmem>>, vector<1x1xf32>
    %371 = vector.broadcast %370 : vector<1x1xf32> to vector<2x1xf32>
    %372 = arith.addf %369, %371 : vector<2x1xf32>
    %c0_150 = arith.constant 0 : index
    %c0_151 = arith.constant 0 : index
    %373 = vector.load %arg34[%c0_150, %c0_151] : memref<2x1xf32, #tpu.memory_space<vmem>>, vector<2x1xf32>
    tpu.vector_store %arg34[%c0_150, %c0_151], %372 {strides = array<i32>} : memref<2x1xf32, #tpu.memory_space<vmem>>, vector<2x1xf32>,
    return
  }
}

</mosaic_0001>

<bundles_post_ra>
// kernel: bert_forward.1
= control target key start
LH: loop header
LB: loop body
LE: loop exit
PB: predicated region body
PF: predicated region fallthrough
CT: control target
= control target key end

     0   :  { %vm148_vm0 = vcmask 261120   ;;  %s3392_s6 = smov 4   ;;  %s3393_s10 = smov 2   ;;  %v3395_v36 = vmov 0.0   ;;  %vm3397_vm1 = vmmov 0   ;;  %vm288_vm2 = vcmask 130048   ;;  %s3782_s0 = inlined_call_operand.smem [shape: u32[35], index: -1, kind: input, shape index: {}] }
   0x1   :  { %s1_s5 = sld [smem:[%s3782_s0]]   ;;  %s3394_s14 = smov 3   ;;  %2996 = vmatprep.subr.mxu1 %v3395_v36  ;;  %2998 = vmatprep.mubr.msk.f32.mxu1 %vm3397_vm1, %v3395_v36  ;;  %v364_v48 = vlaneseq  ;;  %vm369_vm3 = vcmask 64512   ;;  %vm1234_vm4 = vcmask 523264   ;;  %vm2523_vm5 = vcmask 1040384  }
   0x2   :  { %s2789_s9 = sld [smem:[%s3782_s0 + %s3392_s6]]   ;;  %s3396_s18 = smov 5   ;;  %vm2706_vm6 = vcmask 1043456   ;;  %vm2702_vm7 = vcmask 31744   ;;  %vm2780_vm8 = vcmask 1024  }
   0x3   :  { %s2787_s13 = sld [smem:[%s3782_s0 + %s3393_s10]]   ;;  %s3398_s22 = smov 80   ;;  %v365_v49 = vshrl.u32 %v364_v48, 7 }
   0x4   :  { %s2788_s17 = sld [smem:[%s3782_s0 + %s3394_s14]]   ;;  %s3399_s23 = smov 96  }
   0x5   :  { %s2790_s21 = sld [smem:[%s3782_s0 + %s3396_s18]]   ;;  %s3400_s24 = smov 112   ;;  %v366_v50 = vsub.s32 0, %v365_v49  ;;  %v709_v60 = vsub.s32 1, %v365_v49 }
   0x6   :  { %s3401_s25 = smov 1   ;;  %s3402_s29 = smov 48  }
   0x7   :  { %v144_v0 = vld [vmem:[%s1_s5] sm:$0xff]  ;;  %v145_v1 = vld [vmem:[%s1_s5 + $0x8] sm:$0xff]  ;;  %s2786_s28 = sld [smem:[%s3782_s0 + %s3401_s25]]   ;;  %s3403_s30 = smov 64  }
   0x8   :  { %v149_v2 = vsel %vm148_vm0, %v144_v0, 0.0  ;;  %v152_v3 = vsel %vm148_vm0, %v145_v1, 0.0  ;;  %v193_v14 = vld [vmem:[%s2789_s9] sm:$0xff]  ;;  %v194_v15 = vld [vmem:[%s2789_s9 + $0x8] sm:$0xff]  ;;  %v195_v16 = vld [vmem:[%s2789_s9 + $0x10] sm:$0xff]  ;;  %s3404_s1 = smov 6  }
   0x9   :  { %150 = vadd.xlane.f32.xlu0 %v149_v2  ;;  %v3196_v17 = vpack.c.bf16 %v194_v15, %v193_v14  ;;  %v196_v18 = vld [vmem:[%s2789_s9 + $0x18] sm:$0xff]  ;;  %v2820_v27 = vld [vmem:[%s2787_s13] ss:$0 sm:$0xff]  ;;  %s2791_s4 = sld [smem:[%s3782_s0 + %s3404_s1]]   ;;  %s3405_s5 = smov 16  }
   0xa   :  { %v3200_v19 = vpack.c.bf16 %v196_v18, %v195_v16  ;;  %v2821_v29 = vld [vmem:[%s2788_s17] ss:$0 sm:$0xff]  ;;  %s3406_s6 = smov 7   ;;  %s3407_s10 = smov 10  }
   0xb   :  { %3197 = vmatprep.subr.bf16.mxu0 %v3196_v17  ;;  %v2822_v37 = vld [vmem:[%s2790_s21] ss:$0 sm:$0xff]  ;;  %s2792_s9 = sld [smem:[%s3782_s0 + %s3406_s6]]   ;;  %s3408_s14 = smov 8  }
   0xc   :  { %3199 = vmatpush3.bf16.msra.mxu0 %v3196_v17  ;;  %s2795_s13 = sld [smem:[%s3782_s0 + %s3407_s10]]   ;;  %s3409_s18 = smov 9  }
   0xd   :  { %153 = vadd.xlane.f32.xlu0 %v152_v3  ;;  %3201 = vmatprep.subr.bf16.mxu0 %v3200_v19  ;;  %v192_v51 = vld [vmem:[%s2786_s28] sm:$0x3]  ;;  %s2793_s17 = sld [smem:[%s3782_s0 + %s3408_s14]]   ;;  %s3410_s25 = smov 12  }
   0xe   :  { %v3510_v52 = vrot.slane %v192_v51, %v366_v50  ;;  %s2794_s21 = sld [smem:[%s3782_s0 + %s3409_s18]]   ;;  %s3411_s1 = smov 11  }
   0xf   :  { %s2797_s28 = sld [smem:[%s3782_s0 + %s3410_s25]]   ;;  %s3412_s6 = smov 13  }
  0x10   :  { %3203 = vmatpush3.bf16.msra.mxu0 %v3200_v19  ;;  %s2801_s12 = sld [smem:[%s3782_s0 + %s3405_s5]]   ;;  %s3419_s7 = smov 20  }
  0x11   :  { %3006 = vmatprep.subr.mxu0 %v3395_v36  ;;  %s2805_s10 = sld [smem:[%s3782_s0 + %s3419_s7]]   ;;  %s3420_s11 = smov 21  }
  0x12   :  { %s2806_s14 = sld [smem:[%s3782_s0 + %s3420_s11]]   ;;  %s3421_s15 = smov 24  }
  0x13   :  { %s2809_s18 = sld [smem:[%s3782_s0 + %s3421_s15]]   ;;  %s3422_s19 = smov 23  }
  0x14   :  { %s2808_s25 = sld [smem:[%s3782_s0 + %s3422_s19]]   ;;  %s3423_s26 = smov 25  }
  0x96   :  { %v151_v4 = vpop.xlane.xlu0 %150 }
  0x97   :  { %v156_v5 = vmul.f32 0.03125, %v151_v4 }
  0x99   :  { %v158_v6 = vsub.f32 %v144_v0, %v156_v5  ;;  %v3516_v0 = vrot.slane %v192_v51, %v709_v60  ;;  %v971_v51 = vld [vmem:[%s2791_s4] sm:$0xff] }
  0x9a   :  { %v154_v7 = vpop.xlane.xlu0 %153 }
  0x9b   :  { %v157_v8 = vmul.f32 0.03125, %v154_v7  ;;  %v160_v9 = vmul.f32 %v158_v6, %v158_v6 }
  0x9d   :  { %v159_v10 = vsub.f32 %v145_v1, %v157_v8  ;;  %v162_v11 = vsel %vm148_vm0, %v160_v9, 0.0 }
  0x9e   :  { %163 = vadd.xlane.f32.xlu1 %v162_v11 }
  0x9f   :  { %v161_v12 = vmul.f32 %v159_v10, %v159_v10 }
  0xa1   :  { %v165_v13 = vsel %vm148_vm0, %v161_v12, 0.0 }
  0xa2   :  { %166 = vadd.xlane.f32.xlu1 %v165_v13 }
 0x12b   :  { %v164_v20 = vpop.xlane.xlu1 %163 }
 0x12c   :  { %v168_v21 = vmul.f32 0.03125, %v164_v20 }
 0x12e   :  { %v170_v22 = vadd.f32 1e-12, %v168_v21 }
 0x12f   :  { %v167_v23 = vpop.xlane.xlu1 %166 }
 0x130   :  { %3330 = vrsqrt.f32 %v170_v22  ;;  %v169_v24 = vmul.f32 0.03125, %v167_v23 }
 0x132   :  { %v171_v25 = vadd.f32 1e-12, %v169_v24 }
 0x134   :  { %3332 = vrsqrt.f32 %v171_v25 }
 0x13a   :  { %v3331_v26 = vpop.eup %3330 }
 0x13b   :  { %v174_v28 = vmul.f32 %v3331_v26, %v158_v6 }
 0x13d   :  { %v182_v30 = vmul.f32 %v2820_v27, %v174_v28 }
 0x13e   :  { %v3333_v31 = vpop.eup %3332 }
 0x13f   :  { %v175_v32 = vmul.f32 %v3333_v31, %v159_v10  ;;  %v3455_v33 = vadd.f32 %v2821_v29, %v182_v30 }
 0x141   :  { %v183_v34 = vmul.f32 %v2820_v27, %v175_v32  ;;  %2993 = vmatprep.mubr.msk.f32.mxu0 %vm148_vm0, %v3455_v33 }
 0x143   :  { %v3459_v35 = vadd.f32 %v2821_v29, %v183_v34 }
 0x145   :  { %2994 = vmatmul.mubr.msk.f32.vlgmr.msra.gmra.mrb[0].mxu0 %vm148_vm0, %v3459_v35 }
 0x146   :  { %3008 = vmatprep.mubr.msk.f32.mxu0 %vm3397_vm1, %v3395_v36 }
 0x218   :  { %v2995_v38 = vpop.f32.mrb[0].mxu0 }
 0x219   :  { %v276_v39 = vpop.f32.mrb[1].mxu0  ;;  %v3478_v41 = vadd.f32 %v2995_v38, %v2822_v37 }
 0x21a   :  { %v3472_v40 = vadd.f32 %v2822_v37, %v276_v39 }
 0x21c   :  { %459 = vrot.lane.b32.xlu1 %v3472_v40, %s3398_s22  ;;  %286 = vrot.lane.b32.xlu0 %v3472_v40, %s3399_s23 }
 0x220   :  { %457 = vrot.lane.b32.xlu1 %v3472_v40, %s3400_s24  ;;  %801 = vrot.lane.b32.xlu0 %v3478_v41, %s3398_s22 }
 0x224   :  { %630 = vrot.lane.b32.xlu1 %v3478_v41, %s3399_s23 }
 0x228   :  { %799 = vrot.lane.b32.xlu1 %v3478_v41, %s3400_s24 }
 0x28e   :  { %v460_v42 = vpop.permute.xlu1 %459  ;;  %v287_v43 = vpop.permute.xlu0 %286 }
 0x28f   :  { %2997 = vmatpush3.xpose.msk.msra.mxu1 %vm288_vm2, %v287_v43  ;;  %3007 = vmatpush3.xpose.msk.msra.mxu0 %vm288_vm2, %v460_v42 }
 0x290   :  { %3016 = vmatprep.subr.mxu0 %v3395_v36  ;;  %3001 = vmatprep.subr.mxu1 %v3395_v36 }
 0x292   :  { %v458_v44 = vpop.permute.xlu1 %457  ;;  %2999 = vmatmul.mubr.msk.f32.vlgmr.msra.gmra.mrb[0].mxu1 %vm288_vm2, %v3472_v40  ;;  %v802_v46 = vpop.permute.xlu0 %801 }
 0x293   :  { %3009 = vmatmul.mubr.msk.f32.vlgmr.msra.gmra.mrb[2].mxu0 %vm288_vm2, %v458_v44  ;;  %3003 = vmatprep.mubr.msk.f32.mxu1 %vm3397_vm1, %v3395_v36 }
 0x294   :  { %3018 = vmatprep.mubr.msk.f32.mxu0 %vm3397_vm1, %v3395_v36 }
 0x296   :  { %v631_v45 = vpop.permute.xlu1 %630 }
 0x297   :  { %3017 = vmatpush3.xpose.msk.msra.mxu0 %vm288_vm2, %v631_v45 }
 0x298   :  { %3026 = vmatprep.subr.mxu0 %v3395_v36 }
 0x29a   :  { %3019 = vmatmul.mubr.msk.f32.vlgmr.msra.gmra.mrb[4].mxu0 %vm288_vm2, %v3478_v41  ;;  %v800_v47 = vpop.permute.xlu1 %799 }
 0x29b   :  { %3027 = vmatpush3.xpose.msk.msra.mxu0 %vm288_vm2, %v802_v46  ;;  %3028 = vmatprep.mubr.msk.f32.mxu0 %vm3397_vm1, %v3395_v36 }
 0x29e   :  { %3029 = vmatmul.mubr.msk.f32.vlgmr.msra.gmra.mrb[6].mxu0 %vm288_vm2, %v800_v47 }
 0x365   :  { %v359_v53 = vpop.f32.mrb[0].mxu1 }
 0x366   :  { %v363_v54 = vmul.f32 0.25, %v359_v53  ;;  %v3000_v55 = vpop.f32.mrb[1].mxu1  ;;  %v531_v56 = vpop.f32.mrb[2].mxu0  ;;  %v972_v53 = vld [vmem:[%s2791_s4 + $0x8] sm:$0xff] }
 0x367   :  { %v535_v57 = vmul.f32 0.25, %v531_v56  ;;  %v3010_v58 = vpop.f32.mrb[3].mxu0  ;;  %v3204_v56 = vpack.c.bf16 %v972_v53, %v971_v51  ;;  %v1221_v51 = vld [vmem:[%s2797_s28 + $0x10] sm:$0xff]  ;;  %v1222_v53 = vld [vmem:[%s2797_s28 + $0x18] sm:$0xff] }
 0x368   :  { %v368_v59 = vadd.f32 %v3510_v52, %v363_v54  ;;  %v973_v54 = vld [vmem:[%s2791_s4 + $0x10] sm:$0xff] }
 0x369   :  { %v536_v61 = vadd.f32 %v535_v57, %v3510_v52  ;;  %v974_v57 = vld [vmem:[%s2791_s4 + $0x18] sm:$0xff]  ;;  %3205 = vmatprep.subr.bf16.mxu0 %v3204_v56  ;;  %s2796_s4 = sld [smem:[%s3782_s0 + %s3411_s1]]   ;;  %s3426_s1 = smov 26  }
 0x36a   :  { %v370_v62 = vsel %vm369_vm3, %v368_v59, -inf  ;;  %v3208_v58 = vpack.c.bf16 %v974_v57, %v973_v54  ;;  %3207 = vmatpush3.bf16.msra.mxu0 %v3204_v56  ;;  %v3224_v54 = vpack.c.bf16 %v1222_v53, %v1221_v51  ;;  %v1224_v56 = vld [vmem:[%s2797_s28 + $0x28] sm:$0xff]  ;;  %s2811_s3 = sld [smem:[%s3782_s0 + %s3426_s1]]  }
 0x36b   :  { %371 = vmax.xlane.f32.xlu0 %v370_v62  ;;  %v537_v63 = vsel %vm369_vm3, %v536_v61, -inf }
 0x36c   :  { %538 = vmax.xlane.f32.xlu1 %v537_v63  ;;  %3209 = vmatprep.subr.bf16.mxu0 %v3208_v58 }
 0x36d   :  { %v702_v1 = vpop.f32.mrb[4].mxu0 }
 0x36e   :  { %v706_v2 = vmul.f32 0.25, %v702_v1  ;;  %v3020_v3 = vpop.f32.mrb[5].mxu0  ;;  %3211 = vmatpush3.bf16.msra.mxu0 %v3208_v58  ;;  %v1225_v58 = vld [vmem:[%s2797_s28 + $0x30] sm:$0xff] }
 0x370   :  { %v711_v4 = vadd.f32 %v3516_v0, %v706_v2 }
 0x371   :  { %v873_v5 = vpop.f32.mrb[6].mxu0 }
 0x372   :  { %v877_v6 = vmul.f32 0.25, %v873_v5  ;;  %v3030_v7 = vpop.f32.mrb[7].mxu0  ;;  %v712_v8 = vsel %vm369_vm3, %v711_v4, -inf }
 0x373   :  { %713 = vmax.xlane.f32.xlu0 %v712_v8 }
 0x374   :  { %v878_v9 = vadd.f32 %v877_v6, %v3516_v0  ;;  %v2837_v6 = vld [vmem:[%s2792_s9] ss:$0 sm:$0xff]  ;;  %s2798_s9 = sld [smem:[%s3782_s0 + %s3412_s6]]  }
 0x376   :  { %v879_v10 = vsel %vm369_vm3, %v878_v9, -inf }
 0x377   :  { %880 = vmax.xlane.f32.xlu0 %v879_v10 }
 0x3f8   :  { %v372_v11 = vpop.xlane.xlu0 %371 }
 0x3f9   :  { %v373_v12 = vsub.f32 %v368_v59, %v372_v11  ;;  %v539_v13 = vpop.xlane.xlu1 %538 }
 0x3fa   :  { %v540_v14 = vsub.f32 %v536_v61, %v539_v13 }
 0x3fb   :  { %v374_v15 = vmul.f32 1.442695, %v373_v12 }
 0x3fc   :  { %v541_v16 = vmul.f32 1.442695, %v540_v14 }
 0x3fd   :  { %3334 = vpow2.f32 %v374_v15 }
 0x3fe   :  { %3336 = vpow2.f32 %v541_v16 }
 0x400   :  { %v714_v17 = vpop.xlane.xlu0 %713 }
 0x401   :  { %v715_v18 = vsub.f32 %v711_v4, %v714_v17 }
 0x403   :  { %v716_v19 = vmul.f32 1.442695, %v715_v18 }
 0x404   :  { %v881_v26 = vpop.xlane.xlu0 %880 }
 0x405   :  { %3338 = vpow2.f32 %v716_v19  ;;  %v882_v27 = vsub.f32 %v878_v9, %v881_v26  ;;  %v1111_v26 = vld [vmem:[%s2795_s13 + $0x10] sm:$0xff] }
 0x407   :  { %v3335_v20 = vpop.eup %3334  ;;  %v883_v28 = vmul.f32 1.442695, %v882_v27  ;;  %v1112_v27 = vld [vmem:[%s2795_s13 + $0x18] sm:$0xff] }
 0x408   :  { %v3337_v21 = vpop.eup %3336  ;;  %v376_v22 = vsel %vm369_vm3, %v3335_v20, 0.0 }
 0x409   :  { %377 = vadd.xlane.f32.xlu0 %v376_v22  ;;  %v543_v23 = vsel %vm369_vm3, %v3337_v21, 0.0  ;;  %3340 = vpow2.f32 %v883_v28  ;;  %v3216_v28 = vpack.c.bf16 %v1112_v27, %v1111_v26 }
 0x40a   :  { %544 = vadd.xlane.f32.xlu1 %v543_v23 }
 0x40f   :  { %v3339_v24 = vpop.eup %3338 }
 0x410   :  { %v718_v25 = vsel %vm369_vm3, %v3339_v24, 0.0 }
 0x411   :  { %719 = vadd.xlane.f32.xlu0 %v718_v25 }
 0x413   :  { %v3341_v29 = vpop.eup %3340 }
 0x414   :  { %v885_v30 = vsel %vm369_vm3, %v3341_v29, 0.0 }
 0x41b   :  { %548 = vrot.lane.b32.xlu1 %v3472_v40, %s3402_s29 }
 0x41f   :  { %723 = vrot.lane.b32.xlu1 %v3478_v41, %s3403_s30 }
 0x427   :  { %381 = vrot.lane.b32.xlu0 %v3472_v40, %s3403_s30 }
 0x443   :  { %886 = vadd.xlane.f32.xlu1 %v885_v30 }
 0x454   :  { %890 = vrot.lane.b32.xlu1 %v3478_v41, %s3402_s29 }
 0x496   :  { %v378_v31 = vpop.xlane.xlu0 %377 }
 0x497   :  { %3342 = vrcp.f32 %v378_v31  ;;  %v545_v32 = vpop.xlane.xlu1 %544 }
 0x498   :  { %3344 = vrcp.f32 %v545_v32 }
 0x49b   :  { %v549_v39 = vpop.permute.xlu1 %548 }
 0x49e   :  { %v720_v34 = vpop.xlane.xlu0 %719 }
 0x49f   :  { %3346 = vrcp.f32 %v720_v34  ;;  %v724_v43 = vpop.permute.xlu1 %723 }
 0x4a1   :  { %v3343_v37 = vpop.eup %3342 }
 0x4a2   :  { %v380_v38 = vmul.f32 %v3343_v37, %v3335_v20  ;;  %v382_v40 = vpop.permute.xlu0 %381  ;;  %v3345_v42 = vpop.eup %3344 }
 0x4a3   :  { %3002 = vmatpush3.msra.mxu1 %v382_v40  ;;  %v547_v41 = vmul.f32 %v3345_v42, %v3337_v21  ;;  %v2841_v42 = vld [vmem:[%s2794_s21] ss:$0 sm:$0xff]  ;;  %s3415_s21 = smov 17  }
 0x4a4   :  { %3004 = vmatmul.mubr.msk.f32.vlgmr.msra.gmra.mrb[2].mxu1 %vm369_vm3, %v380_v38  ;;  %3011 = vmatprep.subr.mxu1 %v3395_v36  ;;  %s2802_s27 = sld [smem:[%s3782_s0 + %s3415_s21]]   ;;  %s3431_s21 = smov 33  }
 0x4a5   :  { %3012 = vmatpush3.msra.mxu1 %v549_v39  ;;  %3013 = vmatprep.mubr.msk.f32.mxu1 %vm3397_vm1, %v3395_v36  ;;  %v2840_v39 = vld [vmem:[%s2793_s17] ss:$0 sm:$0xff]  ;;  %s3414_s17 = smov 15  }
 0x4a6   :  { %3021 = vmatprep.subr.mxu1 %v3395_v36  ;;  %s2800_s20 = sld [smem:[%s3782_s0 + %s3414_s17]]   ;;  %s3430_s17 = smov 29  }
 0x4a8   :  { %3014 = vmatmul.mubr.msk.f32.vlgmr.msra.gmra.mrb[4].mxu1 %vm369_vm3, %v547_v41 }
 0x4a9   :  { %v3347_v44 = vpop.eup %3346  ;;  %3022 = vmatpush3.msra.mxu1 %v724_v43  ;;  %3023 = vmatprep.mubr.msk.f32.mxu1 %vm3397_vm1, %v3395_v36 }
 0x4aa   :  { %v722_v45 = vmul.f32 %v3347_v44, %v3339_v24  ;;  %3031 = vmatprep.subr.mxu1 %v3395_v36  ;;  %v1110_v24 = vld [vmem:[%s2795_s13 + $0x8] sm:$0xff] }
 0x4ac   :  { %3024 = vmatmul.mubr.msk.f32.vlgmr.msra.gmra.mrb[6].mxu1 %vm369_vm3, %v722_v45 }
 0x4ad   :  { %3033 = vmatprep.mubr.msk.f32.mxu1 %vm3397_vm1, %v3395_v36 }
 0x4d0   :  { %v887_v46 = vpop.xlane.xlu1 %886 }
 0x4d1   :  { %3348 = vrcp.f32 %v887_v46 }
 0x4d4   :  { %v891_v47 = vpop.permute.xlu1 %890 }
 0x4d5   :  { %3032 = vmatpush3.msra.mxu1 %v891_v47 }
 0x4db   :  { %v3349_v48 = vpop.eup %3348 }
 0x4dc   :  { %v889_v49 = vmul.f32 %v3349_v48, %v3341_v29  ;;  %v1219_v48 = vld [vmem:[%s2797_s28] sm:$0xff] }
 0x4de   :  { %3034 = vmatmul.mubr.msk.f32.vlgmr.msra.gmra.mrb[8].mxu1 %vm369_vm3, %v889_v49  ;;  %v1220_v49 = vld [vmem:[%s2797_s28 + $0x8] sm:$0xff] }
 0x577   :  { %v453_v50 = vpop.f32.mrb[2].mxu1 }
 0x578   :  { %v3005_v55 = vpop.f32.mrb[3].mxu1 }
 0x579   :  { %v1223_v55 = vld [vmem:[%s2797_s28 + $0x20] sm:$0xff] }
 0x57a   :  { %v3228_v57 = vpack.c.bf16 %v1224_v56, %v1223_v55 }
 0x57b   :  { %v620_v59 = vpop.f32.mrb[4].mxu1 }
 0x57c   :  { %625 = vrot.lane.b32.xlu0 %v620_v59, %s3405_s5  ;;  %v3015_v60 = vpop.f32.mrb[5].mxu1  ;;  %v1226_v59 = vld [vmem:[%s2797_s28 + $0x38] sm:$0xff] }
 0x57d   :  { %v3232_v60 = vpack.c.bf16 %v1226_v59, %v1225_v58  ;;  %v2849_v59 = vld [vmem:[%s2800_s20] ss:$0 sm:$0xff]  ;;  %s2814_s20 = sld [smem:[%s3782_s0 + %s3430_s17]]  }
 0x57f   :  { %v795_v61 = vpop.f32.mrb[6].mxu1 }
 0x580   :  { %v3025_v62 = vpop.f32.mrb[7].mxu1 }
 0x5b1   :  { %v962_v63 = vpop.f32.mrb[8].mxu1 }
 0x5b2   :  { %967 = vrot.lane.b32.xlu1 %v962_v63, %s3405_s5  ;;  %v3035_v1 = vpop.f32.mrb[9].mxu1 }
 0x5ee   :  { %v626_v2 = vpop.permute.xlu0 %625 }
 0x5ef   :  { %v628_v3 = vsel %vm288_vm2, %v453_v50, %v626_v2  ;;  %v3220_v50 = vpack.c.bf16 %v1220_v49, %v1219_v48 }
 0x5f0   :  { %3044 = vmatprep.mubr.msk.f32.mxu0 %vm148_vm0, %v628_v3 }
 0x5f1   :  { %3221 = vmatprep.subr.bf16.mxu0 %v3220_v50 }
 0x624   :  { %v968_v4 = vpop.permute.xlu1 %967 }
 0x625   :  { %v970_v5 = vsel %vm288_vm2, %v795_v61, %v968_v4  ;;  %v2842_v61 = vld [vmem:[%s2796_s4] ss:$0 sm:$0xff]  ;;  %s3427_s4 = smov 27  }
 0x626   :  { %3045 = vmatmul.mubr.msk.f32.vlgmr.msra.gmra.mrb[8].mxu0 %vm148_vm0, %v970_v5  ;;  %s2812_s8 = sld [smem:[%s3782_s0 + %s3427_s4]]  }
 0x627   :  { %3223 = vmatpush3.bf16.msra.mxu0 %v3220_v50 }
 0x628   :  { %3225 = vmatprep.subr.bf16.mxu0 %v3224_v54 }
 0x62b   :  { %3227 = vmatpush3.bf16.msra.mxu0 %v3224_v54 }
 0x62c   :  { %3229 = vmatprep.subr.bf16.mxu0 %v3228_v57 }
 0x62f   :  { %3231 = vmatpush3.bf16.msra.mxu0 %v3228_v57 }
 0x630   :  { %3233 = vmatprep.subr.bf16.mxu0 %v3232_v60 }
 0x633   :  { %3235 = vmatpush3.bf16.msra.mxu0 %v3232_v60 }
 0x634   :  { %3098 = vmatprep.subr.mxu0 %v3395_v36 }
 0x6f9   :  { %v3046_v7 = vpop.f32.mrb[8].mxu0 }
 0x6fa   :  { %v1060_v8 = vadd.f32 %v3046_v7, %v2837_v6  ;;  %v1054_v9 = vpop.f32.mrb[9].mxu0 }
 0x6fb   :  { %v1055_v10 = vadd.f32 %v2837_v6, %v1054_v9 }
 0x6fc   :  { %v1064_v11 = vadd.f32 %v1060_v8, %v3459_v35 }
 0x6fd   :  { %v1063_v12 = vadd.f32 %v1055_v10, %v3455_v33  ;;  %v1109_v33 = vld [vmem:[%s2795_s13] sm:$0xff]  ;;  %s3413_s13 = smov 14  }
 0x6fe   :  { %v1070_v13 = vsel %vm148_vm0, %v1064_v11, 0.0  ;;  %v3212_v25 = vpack.c.bf16 %v1110_v24, %v1109_v33  ;;  %s2799_s16 = sld [smem:[%s3782_s0 + %s3413_s13]]   ;;  %s3429_s13 = smov 32  }
 0x6ff   :  { %1071 = vadd.xlane.f32.xlu1 %v1070_v13  ;;  %v1067_v14 = vsel %vm148_vm0, %v1063_v12, 0.0 }
 0x700   :  { %1068 = vadd.xlane.f32.xlu0 %v1067_v14  ;;  %3213 = vmatprep.subr.bf16.mxu1 %v3212_v25 }
 0x701   :  { %3215 = vmatpush3.bf16.msra.mxu1 %v3212_v25 }
 0x702   :  { %3217 = vmatprep.subr.bf16.mxu1 %v3216_v28 }
 0x704   :  { %v2848_v55 = vld [vmem:[%s2799_s16] ss:$0 sm:$0xff]  ;;  %s2817_s16 = sld [smem:[%s3782_s0 + %s3429_s13]]  }
 0x705   :  { %3219 = vmatpush3.bf16.msra.mxu1 %v3216_v28 }
 0x78c   :  { %v1072_v15 = vpop.xlane.xlu1 %1071 }
 0x78d   :  { %v1074_v16 = vmul.f32 0.03125, %v1072_v15  ;;  %v1069_v17 = vpop.xlane.xlu0 %1068 }
 0x78e   :  { %v1073_v18 = vmul.f32 0.03125, %v1069_v17 }
 0x78f   :  { %v1076_v19 = vsub.f32 %v1064_v11, %v1074_v16 }
 0x790   :  { %v1075_v20 = vsub.f32 %v1063_v12, %v1073_v18 }
 0x791   :  { %v1078_v23 = vmul.f32 %v1076_v19, %v1076_v19 }
 0x792   :  { %v1077_v21 = vmul.f32 %v1075_v20, %v1075_v20 }
 0x793   :  { %v1082_v35 = vsel %vm148_vm0, %v1078_v23, 0.0 }
 0x794   :  { %v1079_v22 = vsel %vm148_vm0, %v1077_v21, 0.0  ;;  %v2845_v21 = vld [vmem:[%s2798_s9] ss:$0 sm:$0xff]  ;;  %s3428_s9 = smov 30  }
 0x795   :  { %1080 = vadd.xlane.f32.xlu0 %v1079_v22 }
 0x799   :  { %1083 = vadd.xlane.f32.xlu0 %v1082_v35 }
 0x822   :  { %v1081_v29 = vpop.xlane.xlu0 %1080 }
 0x823   :  { %v1085_v30 = vmul.f32 0.03125, %v1081_v29 }
 0x825   :  { %v1087_v31 = vadd.f32 1e-12, %v1085_v30 }
 0x826   :  { %v1084_v32 = vpop.xlane.xlu0 %1083 }
 0x827   :  { %3350 = vrsqrt.f32 %v1087_v31  ;;  %v1086_v34 = vmul.f32 0.03125, %v1084_v32 }
 0x829   :  { %v1088_v37 = vadd.f32 1e-12, %v1086_v34 }
 0x82b   :  { %3352 = vrsqrt.f32 %v1088_v37 }
 0x831   :  { %v3351_v38 = vpop.eup %3350 }
 0x832   :  { %v1091_v40 = vmul.f32 %v3351_v38, %v1075_v20 }
 0x834   :  { %v1099_v41 = vmul.f32 %v2840_v39, %v1091_v40 }
 0x835   :  { %v3353_v43 = vpop.eup %3352 }
 0x836   :  { %v1092_v44 = vmul.f32 %v3353_v43, %v1076_v19  ;;  %v3574_v45 = vadd.f32 %v2841_v42, %v1099_v41  ;;  %v1363_v41 = vld [vmem:[%s2801_s12 + $0x8] sm:$0xff] }
 0x838   :  { %v1100_v46 = vmul.f32 %v2840_v39, %v1092_v44  ;;  %3055 = vmatprep.mubr.msk.f32.mxu1 %vm148_vm0, %v3574_v45  ;;  %v1364_v44 = vld [vmem:[%s2801_s12 + $0x10] sm:$0xff] }
 0x83a   :  { %v3578_v47 = vadd.f32 %v2841_v42, %v1100_v46  ;;  %v1362_v42 = vld [vmem:[%s2801_s12] sm:$0xff] }
 0x83b   :  { %v3236_v43 = vpack.c.bf16 %v1363_v41, %v1362_v42 }
 0x83c   :  { %3056 = vmatmul.mubr.msk.f32.vlgmr.msra.gmra.mrb[10].mxu1 %vm148_vm0, %v3578_v47 }
 0x83d   :  { %3237 = vmatprep.subr.bf16.mxu1 %v3236_v43 }
 0x83e   :  { %3239 = vmatpush3.bf16.msra.mxu1 %v3236_v43 }
 0x90f   :  { %v3057_v62 = vpop.f32.mrb[10].mxu1 }
 0x910   :  { %v1198_v63 = vadd.f32 %v3057_v62, %v2842_v61  ;;  %v1192_v1 = vpop.f32.mrb[11].mxu1 }
 0x911   :  { %v1193_v2 = vadd.f32 %v2842_v61, %v1192_v1  ;;  %v2850_v1 = vld [vmem:[%s2802_s27] ss:$0 sm:$0xff]  ;;  %s2818_s27 = sld [smem:[%s3782_s0 + %s3431_s21]]  }
 0x912   :  { %v1204_v3 = vmul.f32 0.044715, %v1198_v63  ;;  %v1202_v18 = vmul.f32 0.5, %v1198_v63 }
 0x913   :  { %v1203_v4 = vmul.f32 0.044715, %v1193_v2  ;;  %v1201_v16 = vmul.f32 0.5, %v1193_v2 }
 0x914   :  { %v1206_v5 = vmul.f32 %v1204_v3, %v1198_v63 }
 0x915   :  { %v1205_v6 = vmul.f32 %v1203_v4, %v1193_v2 }
 0x916   :  { %v1208_v7 = vmul.f32 %v1206_v5, %v1198_v63 }
 0x917   :  { %v1207_v8 = vmul.f32 %v1205_v6, %v1193_v2 }
 0x918   :  { %v1210_v9 = vadd.f32 %v1208_v7, %v1198_v63 }
 0x919   :  { %v1209_v10 = vadd.f32 %v1207_v8, %v1193_v2 }
 0x91a   :  { %v1212_v11 = vmul.f32 0.7978846, %v1210_v9 }
 0x91b   :  { %v1211_v12 = vmul.f32 0.7978846, %v1209_v10 }
 0x91c   :  { %3354 = vtanh.f32 %v1212_v11 }
 0x91d   :  { %3356 = vtanh.f32 %v1211_v12 }
 0x926   :  { %v3355_v13 = vpop.eup %3354 }
 0x927   :  { %v3357_v14 = vpop.eup %3356  ;;  %v1216_v15 = vadd.f32 1.0, %v3355_v13 }
 0x928   :  { %v1215_v17 = vadd.f32 1.0, %v3357_v14 }
 0x929   :  { %v1218_v20 = vmul.f32 %v1216_v15, %v1202_v18 }
 0x92a   :  { %v1217_v19 = vmul.f32 %v1215_v17, %v1201_v16 }
 0x92c   :  { %3074 = vmatprep.mubr.msk.f32.mxu0 %vm1234_vm4, %v1217_v19 }
 0x92d   :  { %3075 = vmatmul.mubr.msk.f32.vlgmr.msra.gmra.mrb[10].mxu0 %vm1234_vm4, %v1218_v20 }
 0x92e   :  { %3100 = vmatprep.mubr.msk.f32.mxu0 %vm3397_vm1, %v3395_v36 }
 0xa00   :  { %v3076_v22 = vpop.f32.mrb[10].mxu0 }
 0xa01   :  { %v1313_v23 = vadd.f32 %v3076_v22, %v2845_v21  ;;  %v1307_v35 = vpop.f32.mrb[11].mxu0 }
 0xa02   :  { %v1308_v33 = vadd.f32 %v2845_v21, %v1307_v35 }
 0xa03   :  { %v1317_v24 = vadd.f32 %v1313_v23, %v3578_v47 }
 0xa04   :  { %v1316_v25 = vadd.f32 %v1308_v33, %v3574_v45  ;;  %v1365_v45 = vld [vmem:[%s2801_s12 + $0x18] sm:$0xff]  ;;  %s2815_s12 = sld [smem:[%s3782_s0 + %s3428_s9]]  }
 0xa05   :  { %v1323_v26 = vsel %vm148_vm0, %v1317_v24, 0.0  ;;  %v3240_v46 = vpack.c.bf16 %v1365_v45, %v1364_v44 }
 0xa06   :  { %1324 = vadd.xlane.f32.xlu1 %v1323_v26  ;;  %v1320_v27 = vsel %vm148_vm0, %v1316_v25, 0.0 }
 0xa07   :  { %1321 = vadd.xlane.f32.xlu0 %v1320_v27  ;;  %3241 = vmatprep.subr.bf16.mxu1 %v3240_v46 }
 0xa08   :  { %3243 = vmatpush3.bf16.msra.mxu1 %v3240_v46 }
 0xa09   :  { %3088 = vmatprep.subr.mxu1 %v3395_v36 }
 0xa93   :  { %v1325_v28 = vpop.xlane.xlu1 %1324 }
 0xa94   :  { %v1327_v29 = vmul.f32 0.03125, %v1325_v28  ;;  %v1322_v30 = vpop.xlane.xlu0 %1321 }
 0xa95   :  { %v1326_v31 = vmul.f32 0.03125, %v1322_v30 }
 0xa96   :  { %v1329_v32 = vsub.f32 %v1317_v24, %v1327_v29 }
 0xa97   :  { %v1328_v34 = vsub.f32 %v1316_v25, %v1326_v31 }
 0xa98   :  { %v1331_v37 = vmul.f32 %v1329_v32, %v1329_v32 }
 0xa99   :  { %v1330_v38 = vmul.f32 %v1328_v34, %v1328_v34 }
 0xa9a   :  { %v1335_v39 = vsel %vm148_vm0, %v1331_v37, 0.0 }
 0xa9b   :  { %1336 = vadd.xlane.f32.xlu1 %v1335_v39  ;;  %v1332_v40 = vsel %vm148_vm0, %v1330_v38, 0.0 }
 0xa9c   :  { %1333 = vadd.xlane.f32.xlu0 %v1332_v40 }
 0xb28   :  { %v1337_v47 = vpop.xlane.xlu1 %1336 }
 0xb29   :  { %v1339_v48 = vmul.f32 0.03125, %v1337_v47  ;;  %v1334_v49 = vpop.xlane.xlu0 %1333 }
 0xb2a   :  { %v1338_v50 = vmul.f32 0.03125, %v1334_v49 }
 0xb2b   :  { %v1341_v51 = vadd.f32 1e-12, %v1339_v48 }
 0xb2c   :  { %v1340_v53 = vadd.f32 1e-12, %v1338_v50 }
 0xb2d   :  { %3358 = vrsqrt.f32 %v1341_v51 }
 0xb2e   :  { %3360 = vrsqrt.f32 %v1340_v53 }
 0xb37   :  { %v3359_v54 = vpop.eup %3358 }
 0xb38   :  { %v3361_v56 = vpop.eup %3360  ;;  %v1345_v57 = vmul.f32 %v3359_v54, %v1329_v32 }
 0xb39   :  { %v1344_v58 = vmul.f32 %v3361_v56, %v1328_v34 }
 0xb3a   :  { %v1353_v60 = vmul.f32 %v2848_v55, %v1345_v57 }
 0xb3b   :  { %v1352_v61 = vmul.f32 %v2848_v55, %v1344_v58 }
 0xb3c   :  { %v3615_v63 = vadd.f32 %v2849_v59, %v1353_v60 }
 0xb3d   :  { %v3613_v62 = vadd.f32 %v2849_v59, %v1352_v61 }
 0xb3f   :  { %3085 = vmatprep.mubr.msk.f32.mxu1 %vm148_vm0, %v3613_v62 }
 0xb40   :  { %3086 = vmatmul.mubr.msk.f32.vlgmr.msra.gmra.mrb[12].mxu1 %vm148_vm0, %v3615_v63 }
 0xb41   :  { %3090 = vmatprep.mubr.msk.f32.mxu1 %vm3397_vm1, %v3395_v36 }
 0xc13   :  { %v3087_v2 = vpop.f32.mrb[12].mxu1 }
 0xc14   :  { %v1445_v3 = vpop.f32.mrb[13].mxu1  ;;  %v3632_v5 = vadd.f32 %v3087_v2, %v2850_v1 }
 0xc15   :  { %v3626_v4 = vadd.f32 %v2850_v1, %v1445_v3 }
 0xc17   :  { %1622 = vrot.lane.b32.xlu1 %v3626_v4, %s3398_s22  ;;  %1455 = vrot.lane.b32.xlu0 %v3626_v4, %s3399_s23 }
 0xc1b   :  { %1620 = vrot.lane.b32.xlu1 %v3626_v4, %s3400_s24  ;;  %1960 = vrot.lane.b32.xlu0 %v3632_v5, %s3398_s22  ;;  %s3416_s22 = smov 18  }
 0xc1f   :  { %1793 = vrot.lane.b32.xlu1 %v3632_v5, %s3399_s23  ;;  %s2810_s23 = sld [smem:[%s3782_s0 + %s3423_s26]]  }
 0xc23   :  { %1958 = vrot.lane.b32.xlu1 %v3632_v5, %s3400_s24  ;;  %s3424_s24 = smov 28  }
 0xc24   :  { %s2813_s28 = sld [smem:[%s3782_s0 + %s3424_s24]]  }
 0xc89   :  { %v1623_v6 = vpop.permute.xlu1 %1622  ;;  %v1456_v7 = vpop.permute.xlu0 %1455 }
 0xc8a   :  { %3089 = vmatpush3.xpose.msk.msra.mxu1 %vm288_vm2, %v1456_v7  ;;  %3099 = vmatpush3.xpose.msk.msra.mxu0 %vm288_vm2, %v1623_v6 }
 0xc8b   :  { %3108 = vmatprep.subr.mxu0 %v3395_v36  ;;  %3093 = vmatprep.subr.mxu1 %v3395_v36 }
 0xc8d   :  { %v1621_v8 = vpop.permute.xlu1 %1620  ;;  %3091 = vmatmul.mubr.msk.f32.vlgmr.msra.gmra.mrb[14].mxu1 %vm288_vm2, %v3626_v4  ;;  %v1961_v10 = vpop.permute.xlu0 %1960 }
 0xc8e   :  { %3101 = vmatmul.mubr.msk.f32.vlgmr.msra.gmra.mrb[12].mxu0 %vm288_vm2, %v1621_v8  ;;  %3095 = vmatprep.mubr.msk.f32.mxu1 %vm3397_vm1, %v3395_v36 }
 0xc8f   :  { %3110 = vmatprep.mubr.msk.f32.mxu0 %vm3397_vm1, %v3395_v36 }
 0xc91   :  { %v1794_v9 = vpop.permute.xlu1 %1793 }
 0xc92   :  { %3109 = vmatpush3.xpose.msk.msra.mxu0 %vm288_vm2, %v1794_v9 }
 0xc93   :  { %3118 = vmatprep.subr.mxu0 %v3395_v36 }
 0xc95   :  { %3111 = vmatmul.mubr.msk.f32.vlgmr.msra.gmra.mrb[14].mxu0 %vm288_vm2, %v3632_v5  ;;  %v1959_v11 = vpop.permute.xlu1 %1958 }
 0xc96   :  { %3119 = vmatpush3.xpose.msk.msra.mxu0 %vm288_vm2, %v1961_v10  ;;  %3120 = vmatprep.mubr.msk.f32.mxu0 %vm3397_vm1, %v3395_v36 }
 0xc99   :  { %3121 = vmatmul.mubr.msk.f32.vlgmr.msra.gmra.mrb[16].mxu0 %vm288_vm2, %v1959_v11 }
 0xd60   :  { %v1527_v12 = vpop.f32.mrb[14].mxu1 }
 0xd61   :  { %v1531_v13 = vmul.f32 0.25, %v1527_v12  ;;  %v3092_v14 = vpop.f32.mrb[15].mxu1  ;;  %v1694_v15 = vpop.f32.mrb[12].mxu0 }
 0xd62   :  { %v1698_v16 = vmul.f32 0.25, %v1694_v15  ;;  %v3102_v17 = vpop.f32.mrb[13].mxu0 }
 0xd63   :  { %v1532_v18 = vadd.f32 %v1531_v13, %v3510_v52 }
 0xd64   :  { %v1699_v19 = vadd.f32 %v1698_v16, %v3510_v52 }
 0xd65   :  { %v1533_v20 = vsel %vm369_vm3, %v1532_v18, -inf }
 0xd66   :  { %1534 = vmax.xlane.f32.xlu0 %v1533_v20  ;;  %v1700_v21 = vsel %vm369_vm3, %v1699_v19, -inf }
 0xd67   :  { %1701 = vmax.xlane.f32.xlu1 %v1700_v21 }
 0xd68   :  { %v1865_v22 = vpop.f32.mrb[14].mxu0 }
 0xd69   :  { %v1869_v23 = vmul.f32 0.25, %v1865_v22  ;;  %v3112_v35 = vpop.f32.mrb[15].mxu0 }
 0xd6b   :  { %v1870_v33 = vadd.f32 %v1869_v23, %v3516_v0 }
 0xd6c   :  { %v2032_v24 = vpop.f32.mrb[16].mxu0 }
 0xd6d   :  { %v2036_v25 = vmul.f32 0.25, %v2032_v24  ;;  %v3122_v26 = vpop.f32.mrb[17].mxu0  ;;  %v1871_v27 = vsel %vm369_vm3, %v1870_v33, -inf }
 0xd6e   :  { %1872 = vmax.xlane.f32.xlu0 %v1871_v27 }
 0xd6f   :  { %v2037_v28 = vadd.f32 %v2036_v25, %v3516_v0 }
 0xd71   :  { %v2038_v52 = vsel %vm369_vm3, %v2037_v28, -inf }
 0xd72   :  { %2039 = vmax.xlane.f32.xlu0 %v2038_v52 }
 0xdf3   :  { %v1535_v29 = vpop.xlane.xlu0 %1534 }
 0xdf4   :  { %v1536_v30 = vsub.f32 %v1532_v18, %v1535_v29  ;;  %v1702_v31 = vpop.xlane.xlu1 %1701 }
 0xdf5   :  { %v1703_v32 = vsub.f32 %v1699_v19, %v1702_v31 }
 0xdf6   :  { %v1537_v34 = vmul.f32 1.442695, %v1536_v30 }
 0xdf7   :  { %v1704_v37 = vmul.f32 1.442695, %v1703_v32 }
 0xdf8   :  { %3362 = vpow2.f32 %v1537_v34 }
 0xdf9   :  { %3364 = vpow2.f32 %v1704_v37 }
 0xdfb   :  { %v1873_v38 = vpop.xlane.xlu0 %1872 }
 0xdfc   :  { %v1874_v39 = vsub.f32 %v1870_v33, %v1873_v38 }
 0xdfe   :  { %v1875_v40 = vmul.f32 1.442695, %v1874_v39 }
 0xdff   :  { %v2040_v46 = vpop.xlane.xlu0 %2039 }
 0xe00   :  { %3366 = vpow2.f32 %v1875_v40  ;;  %v2041_v47 = vsub.f32 %v2037_v28, %v2040_v46 }
 0xe02   :  { %v3363_v42 = vpop.eup %3362  ;;  %v2042_v48 = vmul.f32 1.442695, %v2041_v47 }
 0xe03   :  { %v3365_v41 = vpop.eup %3364  ;;  %v1539_v43 = vsel %vm369_vm3, %v3363_v42, 0.0 }
 0xe04   :  { %1540 = vadd.xlane.f32.xlu0 %v1539_v43  ;;  %v1706_v0 = vsel %vm369_vm3, %v3365_v41, 0.0  ;;  %3368 = vpow2.f32 %v2042_v48 }
 0xe05   :  { %1707 = vadd.xlane.f32.xlu1 %v1706_v0 }
 0xe0a   :  { %v3367_v44 = vpop.eup %3366 }
 0xe0b   :  { %v1877_v45 = vsel %vm369_vm3, %v3367_v44, 0.0 }
 0xe0c   :  { %1878 = vadd.xlane.f32.xlu0 %v1877_v45 }
 0xe0e   :  { %v3369_v49 = vpop.eup %3368 }
 0xe0f   :  { %v2044_v50 = vsel %vm369_vm3, %v3369_v49, 0.0 }
 0xe16   :  { %1711 = vrot.lane.b32.xlu1 %v3626_v4, %s3402_s29 }
 0xe1a   :  { %1882 = vrot.lane.b32.xlu1 %v3632_v5, %s3403_s30 }
 0xe22   :  { %1544 = vrot.lane.b32.xlu0 %v3626_v4, %s3403_s30  ;;  %s3417_s30 = smov 19  }
 0xe23   :  { %s2804_s2 = sld [smem:[%s3782_s0 + %s3417_s30]]   ;;  %s3433_s30 = smov 34  }
 0xe29   :  { %v2865_v33 = vld [vmem:[%s2804_s2] ss:$0 sm:$0xff]  ;;  %s2819_s2 = sld [smem:[%s3782_s0 + %s3433_s30]]  }
 0xe3e   :  { %2045 = vadd.xlane.f32.xlu1 %v2044_v50 }
 0xe4f   :  { %2049 = vrot.lane.b32.xlu1 %v3632_v5, %s3402_s29  ;;  %s2803_s29 = sld [smem:[%s3782_s0 + %s3416_s22]]   ;;  %s3432_s22 = smov 31  }
 0xe55   :  { %v2130_v8 = vld [vmem:[%s2803_s29] sm:$0xff]  ;;  %v2131_v9 = vld [vmem:[%s2803_s29 + $0x8] sm:$0xff]  ;;  %v2132_v10 = vld [vmem:[%s2803_s29 + $0x10] sm:$0xff] }
 0xe56   :  { %v3244_v12 = vpack.c.bf16 %v2131_v9, %v2130_v8  ;;  %v2133_v13 = vld [vmem:[%s2803_s29 + $0x18] sm:$0xff]  ;;  %v2382_v9 = vld [vmem:[%s2809_s18 + $0x20] sm:$0xff]  ;;  %s2816_s29 = sld [smem:[%s3782_s0 + %s3432_s22]]  }
 0xe57   :  { %v3248_v14 = vpack.c.bf16 %v2133_v13, %v2132_v10  ;;  %v2383_v10 = vld [vmem:[%s2809_s18 + $0x28] sm:$0xff]  ;;  %v2385_v13 = vld [vmem:[%s2809_s18 + $0x38] sm:$0xff] }
 0xe58   :  { %3245 = vmatprep.subr.bf16.mxu0 %v3244_v12 }
 0xe59   :  { %3247 = vmatpush3.bf16.msra.mxu0 %v3244_v12  ;;  %v2384_v12 = vld [vmem:[%s2809_s18 + $0x30] sm:$0xff] }
 0xe5a   :  { %3249 = vmatprep.subr.bf16.mxu0 %v3248_v14 }
 0xe5d   :  { %3251 = vmatpush3.bf16.msra.mxu0 %v3248_v14  ;;  %v3272_v14 = vpack.c.bf16 %v2385_v13, %v2384_v12  ;;  %v2877_v12 = vld [vmem:[%s2812_s8] ss:$0 sm:$0xff] }
 0xe91   :  { %v1541_v51 = vpop.xlane.xlu0 %1540 }
 0xe92   :  { %3370 = vrcp.f32 %v1541_v51  ;;  %v1708_v53 = vpop.xlane.xlu1 %1707 }
 0xe93   :  { %3372 = vrcp.f32 %v1708_v53 }
 0xe96   :  { %v1712_v57 = vpop.permute.xlu1 %1711 }
 0xe99   :  { %v1879_v54 = vpop.xlane.xlu0 %1878 }
 0xe9a   :  { %3374 = vrcp.f32 %v1879_v54  ;;  %v1883_v61 = vpop.permute.xlu1 %1882 }
 0xe9c   :  { %v3371_v55 = vpop.eup %3370 }
 0xe9d   :  { %v1543_v56 = vmul.f32 %v3371_v55, %v3363_v42  ;;  %v1545_v58 = vpop.permute.xlu0 %1544  ;;  %v3373_v59 = vpop.eup %3372  ;;  %v2868_v55 = vld [vmem:[%s2805_s10] ss:$0 sm:$0xff] }
 0xe9e   :  { %3094 = vmatpush3.msra.mxu1 %v1545_v58  ;;  %v1710_v60 = vmul.f32 %v3373_v59, %v3365_v41 }
 0xe9f   :  { %3096 = vmatmul.mubr.msk.f32.vlgmr.msra.gmra.mrb[16].mxu1 %vm369_vm3, %v1543_v56  ;;  %3103 = vmatprep.subr.mxu1 %v3395_v36 }
 0xea0   :  { %3104 = vmatpush3.msra.mxu1 %v1712_v57  ;;  %3105 = vmatprep.mubr.msk.f32.mxu1 %vm3397_vm1, %v3395_v36  ;;  %v2869_v57 = vld [vmem:[%s2806_s14] ss:$0 sm:$0xff] }
 0xea1   :  { %3113 = vmatprep.subr.mxu1 %v3395_v36 }
 0xea3   :  { %3106 = vmatmul.mubr.msk.f32.vlgmr.msra.gmra.mrb[18].mxu1 %vm369_vm3, %v1710_v60 }
 0xea4   :  { %v3375_v1 = vpop.eup %3374  ;;  %3114 = vmatpush3.msra.mxu1 %v1883_v61  ;;  %3115 = vmatprep.mubr.msk.f32.mxu1 %vm3397_vm1, %v3395_v36 }
 0xea5   :  { %v1881_v2 = vmul.f32 %v3375_v1, %v3367_v44  ;;  %3123 = vmatprep.subr.mxu1 %v3395_v36 }
 0xea7   :  { %3116 = vmatmul.mubr.msk.f32.vlgmr.msra.gmra.mrb[20].mxu1 %vm369_vm3, %v1881_v2 }
 0xea8   :  { %3125 = vmatprep.mubr.msk.f32.mxu1 %vm3397_vm1, %v3395_v36 }
 0xecb   :  { %v2046_v3 = vpop.xlane.xlu1 %2045 }
 0xecc   :  { %3376 = vrcp.f32 %v2046_v3  ;;  %v2378_v3 = vld [vmem:[%s2809_s18] sm:$0xff] }
 0xecf   :  { %v2050_v4 = vpop.permute.xlu1 %2049 }
 0xed0   :  { %3124 = vmatpush3.msra.mxu1 %v2050_v4  ;;  %v2379_v4 = vld [vmem:[%s2809_s18 + $0x8] sm:$0xff] }
 0xed6   :  { %v3377_v5 = vpop.eup %3376 }
 0xed7   :  { %v2048_v6 = vmul.f32 %v3377_v5, %v3369_v49  ;;  %v3260_v5 = vpack.c.bf16 %v2379_v4, %v2378_v3 }
 0xed9   :  { %3126 = vmatmul.mubr.msk.f32.vlgmr.msra.gmra.mrb[22].mxu1 %vm369_vm3, %v2048_v6  ;;  %v2380_v6 = vld [vmem:[%s2809_s18 + $0x10] sm:$0xff]  ;;  %3261 = vmatprep.subr.bf16.mxu0 %v3260_v5 }
 0xf72   :  { %v1616_v7 = vpop.f32.mrb[16].mxu1 }
 0xf73   :  { %v3097_v11 = vpop.f32.mrb[17].mxu1 }
 0xf74   :  { %v3268_v11 = vpack.c.bf16 %v2383_v10, %v2382_v9 }
 0xf76   :  { %v1783_v15 = vpop.f32.mrb[18].mxu1 }
 0xf77   :  { %1788 = vrot.lane.b32.xlu0 %v1783_v15, %s3405_s5  ;;  %v3107_v16 = vpop.f32.mrb[19].mxu1  ;;  %v2870_v15 = vld [vmem:[%s2808_s25] ss:$0 sm:$0xff] }
 0xf7a   :  { %v1954_v17 = vpop.f32.mrb[20].mxu1 }
 0xf7b   :  { %v3117_v18 = vpop.f32.mrb[21].mxu1 }
 0xfac   :  { %v2121_v19 = vpop.f32.mrb[22].mxu1 }
 0xfad   :  { %2126 = vrot.lane.b32.xlu1 %v2121_v19, %s3405_s5  ;;  %v3127_v20 = vpop.f32.mrb[23].mxu1  ;;  %s3418_s5 = smov 22  }
 0xfae   :  { %s2807_s6 = sld [smem:[%s3782_s0 + %s3418_s5]]  }
 0xfb4   :  { %v2269_v43 = vld [vmem:[%s2807_s6 + $0x8] sm:$0xff]  ;;  %v2270_v44 = vld [vmem:[%s2807_s6 + $0x10] sm:$0xff]  ;;  %v2271_v45 = vld [vmem:[%s2807_s6 + $0x18] sm:$0xff] }
 0xfb5   :  { %v3256_v46 = vpack.c.bf16 %v2271_v45, %v2270_v44 }
 0xfe9   :  { %v1789_v21 = vpop.permute.xlu0 %1788 }
 0xfea   :  { %v1791_v22 = vsel %vm288_vm2, %v1616_v7, %v1789_v21  ;;  %v2381_v7 = vld [vmem:[%s2809_s18 + $0x18] sm:$0xff] }
 0xfeb   :  { %3136 = vmatprep.mubr.msk.f32.mxu0 %vm148_vm0, %v1791_v22  ;;  %v3264_v8 = vpack.c.bf16 %v2381_v7, %v2380_v6 }
0x101f   :  { %v2127_v23 = vpop.permute.xlu1 %2126 }
0x1020   :  { %v2129_v35 = vsel %vm288_vm2, %v1954_v17, %v2127_v23 }
0x1021   :  { %3137 = vmatmul.mubr.msk.f32.vlgmr.msra.gmra.mrb[18].mxu0 %vm148_vm0, %v2129_v35 }
0x1022   :  { %3263 = vmatpush3.bf16.msra.mxu0 %v3260_v5 }
0x1023   :  { %3265 = vmatprep.subr.bf16.mxu0 %v3264_v8 }
0x1026   :  { %3267 = vmatpush3.bf16.msra.mxu0 %v3264_v8  ;;  %v2876_v8 = vld [vmem:[%s2811_s3] ss:$0 sm:$0xff] }
0x1027   :  { %3269 = vmatprep.subr.bf16.mxu0 %v3268_v11 }
0x102a   :  { %3271 = vmatpush3.bf16.msra.mxu0 %v3268_v11 }
0x102b   :  { %3273 = vmatprep.subr.bf16.mxu0 %v3272_v14 }
0x102e   :  { %3275 = vmatpush3.bf16.msra.mxu0 %v3272_v14 }
0x102f   :  { %3191 = vmatprep.subr.mxu0 %v3395_v36 }
0x10f4   :  { %v3138_v24 = vpop.f32.mrb[18].mxu0 }
0x10f5   :  { %v2219_v25 = vadd.f32 %v3138_v24, %v2865_v33  ;;  %v2213_v26 = vpop.f32.mrb[19].mxu0 }
0x10f6   :  { %v2214_v27 = vadd.f32 %v2865_v33, %v2213_v26 }
0x10f7   :  { %v2223_v28 = vadd.f32 %v2219_v25, %v3615_v63 }
0x10f8   :  { %v2222_v52 = vadd.f32 %v2214_v27, %v3613_v62  ;;  %v2268_v62 = vld [vmem:[%s2807_s6] sm:$0xff] }
0x10f9   :  { %v2229_v29 = vsel %vm148_vm0, %v2223_v28, 0.0  ;;  %v3252_v0 = vpack.c.bf16 %v2269_v43, %v2268_v62 }
0x10fa   :  { %2230 = vadd.xlane.f32.xlu1 %v2229_v29  ;;  %v2226_v30 = vsel %vm148_vm0, %v2222_v52, 0.0 }
0x10fb   :  { %2227 = vadd.xlane.f32.xlu0 %v2226_v30  ;;  %3253 = vmatprep.subr.bf16.mxu1 %v3252_v0 }
0x10fc   :  { %3255 = vmatpush3.bf16.msra.mxu1 %v3252_v0 }
0x10fd   :  { %3257 = vmatprep.subr.bf16.mxu1 %v3256_v46 }
0x1100   :  { %3259 = vmatpush3.bf16.msra.mxu1 %v3256_v46 }
0x1187   :  { %v2231_v31 = vpop.xlane.xlu1 %2230 }
0x1188   :  { %v2233_v32 = vmul.f32 0.03125, %v2231_v31  ;;  %v2228_v34 = vpop.xlane.xlu0 %2227 }
0x1189   :  { %v2232_v37 = vmul.f32 0.03125, %v2228_v34 }
0x118a   :  { %v2235_v38 = vsub.f32 %v2223_v28, %v2233_v32 }
0x118b   :  { %v2234_v39 = vsub.f32 %v2222_v52, %v2232_v37 }
0x118c   :  { %v2237_v41 = vmul.f32 %v2235_v38, %v2235_v38 }
0x118d   :  { %v2236_v40 = vmul.f32 %v2234_v39, %v2234_v39 }
0x118e   :  { %v2241_v63 = vsel %vm148_vm0, %v2237_v41, 0.0 }
0x118f   :  { %v2238_v42 = vsel %vm148_vm0, %v2236_v40, 0.0 }
0x1190   :  { %2239 = vadd.xlane.f32.xlu0 %v2238_v42 }
0x1194   :  { %2242 = vadd.xlane.f32.xlu0 %v2241_v63 }
0x121d   :  { %v2240_v47 = vpop.xlane.xlu0 %2239 }
0x121e   :  { %v2244_v48 = vmul.f32 0.03125, %v2240_v47 }
0x1220   :  { %v2246_v49 = vadd.f32 1e-12, %v2244_v48 }
0x1221   :  { %v2243_v50 = vpop.xlane.xlu0 %2242 }
0x1222   :  { %3378 = vrsqrt.f32 %v2246_v49  ;;  %v2245_v51 = vmul.f32 0.03125, %v2243_v50 }
0x1224   :  { %v2247_v53 = vadd.f32 1e-12, %v2245_v51 }
0x1226   :  { %3380 = vrsqrt.f32 %v2247_v53 }
0x122c   :  { %v3379_v54 = vpop.eup %3378 }
0x122d   :  { %v2250_v56 = vmul.f32 %v3379_v54, %v2234_v39 }
0x122f   :  { %v2258_v58 = vmul.f32 %v2868_v55, %v2250_v56  ;;  %v2526_v56 = vld [vmem:[%s2813_s28 + $0x8] sm:$0xff] }
0x1230   :  { %v3381_v59 = vpop.eup %3380 }
0x1231   :  { %v2251_v60 = vmul.f32 %v3381_v59, %v2235_v38  ;;  %v3721_v61 = vadd.f32 %v2869_v57, %v2258_v58  ;;  %v2873_v38 = vld [vmem:[%s2810_s23] ss:$0 sm:$0xff]  ;;  %v2527_v58 = vld [vmem:[%s2813_s28 + $0x10] sm:$0xff]  ;;  %v2528_v59 = vld [vmem:[%s2813_s28 + $0x18] sm:$0xff] }
0x1233   :  { %v2259_v1 = vmul.f32 %v2868_v55, %v2251_v60  ;;  %3147 = vmatprep.mubr.msk.f32.mxu1 %vm148_vm0, %v3721_v61  ;;  %v2525_v55 = vld [vmem:[%s2813_s28] sm:$0xff]  ;;  %v3425_v60 = vmov 0.0|0.0  }
0x1234   :  { %3276 = vmatprep.subr.bf16.mxu1 %v3425_v60 }
0x1235   :  { %v3725_v2 = vadd.f32 %v2869_v57, %v2259_v1  ;;  %v3277_v57 = vpack.c.bf16 %v2526_v56, %v2525_v55 }
0x1237   :  { %3148 = vmatmul.mubr.msk.f32.vlgmr.msra.gmra.mrb[24].mxu1 %vm148_vm0, %v3725_v2 }
0x1238   :  { %3177 = vmatprep.mubr.msk.f32.mxu1 %vm3397_vm1, %v3395_v36  ;;  %3278 = vmatpush3.bf16.msra.mxu1 %v3277_v57 }
0x1239   :  { %3279 = vmatprep.subr.bf16.mxu1 %v3425_v60 }
0x130a   :  { %v3149_v16 = vpop.f32.mrb[24].mxu1 }
0x130b   :  { %v2357_v17 = vadd.f32 %v3149_v16, %v2870_v15  ;;  %v2351_v18 = vpop.f32.mrb[25].mxu1 }
0x130c   :  { %v2352_v19 = vadd.f32 %v2870_v15, %v2351_v18 }
0x130d   :  { %v2363_v20 = vmul.f32 0.044715, %v2357_v17  ;;  %v2361_v32 = vmul.f32 0.5, %v2357_v17 }
0x130e   :  { %v2362_v21 = vmul.f32 0.044715, %v2352_v19  ;;  %v2360_v30 = vmul.f32 0.5, %v2352_v19 }
0x130f   :  { %v2365_v22 = vmul.f32 %v2363_v20, %v2357_v17  ;;  %v2611_v20 = vld [vmem:[%s2815_s12 + $0x8] sm:$0xff] }
0x1310   :  { %v2364_v23 = vmul.f32 %v2362_v21, %v2352_v19  ;;  %v2612_v21 = vld [vmem:[%s2815_s12 + $0x10] sm:$0xff] }
0x1311   :  { %v2367_v35 = vmul.f32 %v2365_v22, %v2357_v17 }
0x1312   :  { %v2366_v33 = vmul.f32 %v2364_v23, %v2352_v19  ;;  %v2613_v23 = vld [vmem:[%s2815_s12 + $0x18] sm:$0xff] }
0x1313   :  { %v2369_v24 = vadd.f32 %v2367_v35, %v2357_v17  ;;  %v3286_v35 = vpack.c.bf16 %v2613_v23, %v2612_v21 }
0x1314   :  { %v2368_v25 = vadd.f32 %v2366_v33, %v2352_v19  ;;  %v2610_v19 = vld [vmem:[%s2815_s12] sm:$0xff] }
0x1315   :  { %v2371_v26 = vmul.f32 0.7978846, %v2369_v24  ;;  %v3283_v22 = vpack.c.bf16 %v2611_v20, %v2610_v19  ;;  %v2878_v33 = vld [vmem:[%s2814_s20] ss:$0 sm:$0xff] }
0x1316   :  { %v2370_v27 = vmul.f32 0.7978846, %v2368_v25 }
0x1317   :  { %3382 = vtanh.f32 %v2371_v26 }
0x1318   :  { %3384 = vtanh.f32 %v2370_v27 }
0x1321   :  { %v3383_v28 = vpop.eup %3382 }
0x1322   :  { %v3385_v52 = vpop.eup %3384  ;;  %v2375_v29 = vadd.f32 1.0, %v3383_v28  ;;  %v74_v28 = vstv %s2818_s27 }
0x1323   :  { %v2374_v31 = vadd.f32 1.0, %v3385_v52  ;;  %75 = vst [vmem:[#allocation2] sm:$0x1] %v74_v28  ;;  %v2880_v52 = vld [vmem:[%s2816_s29] ss:$0 sm:$0xff] }
0x1324   :  { %v2377_v37 = vmul.f32 %v2375_v29, %v2361_v32 }
0x1325   :  { %v2376_v34 = vmul.f32 %v2374_v31, %v2360_v30 }
0x1327   :  { %3166 = vmatprep.mubr.msk.f32.mxu0 %vm1234_vm4, %v2376_v34 }
0x1328   :  { %3167 = vmatmul.mubr.msk.f32.vlgmr.msra.gmra.mrb[20].mxu0 %vm1234_vm4, %v2377_v37 }
0x1329   :  { %3193 = vmatprep.mubr.msk.f32.mxu0 %vm3397_vm1, %v3395_v36 }
0x132a   :  { %v2882_v32 = vld [vmem:[#allocation2] ss:$0 sm:$0xff] }
0x13fb   :  { %v3168_v39 = vpop.f32.mrb[20].mxu0 }
0x13fc   :  { %v2471_v40 = vadd.f32 %v3168_v39, %v2873_v38  ;;  %v2465_v42 = vpop.f32.mrb[21].mxu0 }
0x13fd   :  { %v2466_v41 = vadd.f32 %v2873_v38, %v2465_v42 }
0x13fe   :  { %v2475_v63 = vadd.f32 %v2471_v40, %v3725_v2 }
0x13ff   :  { %v2474_v62 = vadd.f32 %v2466_v41, %v3721_v61  ;;  %v3280_v61 = vpack.c.bf16 %v2528_v59, %v2527_v58 }
0x1400   :  { %v2481_v43 = vsel %vm148_vm0, %v2475_v63, 0.0 }
0x1401   :  { %2482 = vadd.xlane.f32.xlu0 %v2481_v43  ;;  %v2478_v0 = vsel %vm148_vm0, %v2474_v62, 0.0  ;;  %3281 = vmatpush3.bf16.msra.mxu1 %v3280_v61 }
0x1402   :  { %2479 = vadd.xlane.f32.xlu1 %v2478_v0  ;;  %3282 = vmatprep.subr.bf16.mxu1 %v3425_v60 }
0x148e   :  { %v2483_v44 = vpop.xlane.xlu0 %2482 }
0x148f   :  { %v2485_v45 = vmul.f32 0.03125, %v2483_v44  ;;  %v2480_v46 = vpop.xlane.xlu1 %2479 }
0x1490   :  { %v2484_v47 = vmul.f32 0.03125, %v2480_v46 }
0x1491   :  { %v2487_v48 = vsub.f32 %v2475_v63, %v2485_v45 }
0x1492   :  { %v2486_v49 = vsub.f32 %v2474_v62, %v2484_v47 }
0x1493   :  { %v2489_v50 = vmul.f32 %v2487_v48, %v2487_v48 }
0x1494   :  { %v2488_v51 = vmul.f32 %v2486_v49, %v2486_v49 }
0x1495   :  { %v2493_v53 = vsel %vm148_vm0, %v2489_v50, 0.0 }
0x1496   :  { %2494 = vadd.xlane.f32.xlu0 %v2493_v53  ;;  %v2490_v54 = vsel %vm148_vm0, %v2488_v51, 0.0 }
0x1497   :  { %2491 = vadd.xlane.f32.xlu1 %v2490_v54 }
0x1523   :  { %v2495_v1 = vpop.xlane.xlu0 %2494 }
0x1524   :  { %v2497_v2 = vmul.f32 0.03125, %v2495_v1  ;;  %v2492_v3 = vpop.xlane.xlu1 %2491 }
0x1525   :  { %v2496_v4 = vmul.f32 0.03125, %v2492_v3 }
0x1526   :  { %v2499_v5 = vadd.f32 1e-12, %v2497_v2 }
0x1527   :  { %v2498_v6 = vadd.f32 1e-12, %v2496_v4 }
0x1528   :  { %3386 = vrsqrt.f32 %v2499_v5 }
0x1529   :  { %3388 = vrsqrt.f32 %v2498_v6 }
0x1532   :  { %v3387_v7 = vpop.eup %3386 }
0x1533   :  { %v3389_v9 = vpop.eup %3388  ;;  %v2503_v10 = vmul.f32 %v3387_v7, %v2487_v48 }
0x1534   :  { %v2502_v11 = vmul.f32 %v3389_v9, %v2486_v49 }
0x1535   :  { %v2511_v13 = vmul.f32 %v2876_v8, %v2503_v10 }
0x1536   :  { %v2510_v14 = vmul.f32 %v2876_v8, %v2502_v11 }
0x1537   :  { %v2519_v15 = vadd.f32 %v2877_v12, %v2511_v13 }
0x1538   :  { %v2518_v16 = vadd.f32 %v2877_v12, %v2510_v14 }
0x1539   :  { %v2521_v17 = vrot.slane %v2519_v15, 7 }
0x153b   :  { %v2524_v18 = vsel %vm2523_vm5, %v2518_v16, %v2521_v17 }
0x153c   :  { %3178 = vmatmul.mubr.msk.f32.vlgmr.msra.gmra.mrb[26].mxu1 %vm148_vm0, %v2524_v18 }
0x153d   :  { %3188 = vmatprep.mubr.msk.f32.mxu1 %vm3397_vm1, %v3395_v36  ;;  %3284 = vmatpush3.bf16.msra.mxu1 %v3283_v22  ;;  %v2694_v36 = vld [vmem:[%s2817_s16] sm:$0xf] }
0x153e   :  { %3285 = vmatprep.subr.bf16.mxu1 %v3425_v60  ;;  %3192 = vmatpush3.msk.msra.mxu0 %vm2706_vm6, %v2694_v36 }
0x1541   :  { %3287 = vmatpush3.bf16.msra.mxu1 %v3286_v35 }
0x160f   :  { %v2605_v24 = vpop.f32.mrb[26].mxu1 }
0x1610   :  { %v2606_v25 = vadd.f32 %v2878_v33, %v2605_v24  ;;  %v3179_v26 = vpop.f32.mrb[27].mxu1 }
0x1612   :  { %3390 = vtanh.f32 %v2606_v25 }
0x161c   :  { %v3391_v27 = vpop.eup %3390 }
0x161d   :  { %3189 = vmatmul.mubr.msk.f32.vlgmr.msra.gmra.mrb[28].mxu1 %vm148_vm0, %v3391_v27 }
0x16f0   :  { %v2690_v29 = vpop.f32.mrb[28].mxu1 }
0x16f1   :  { %v2691_v30 = vadd.f32 %v2880_v52, %v2690_v29  ;;  %v3190_v31 = vpop.f32.mrb[29].mxu1 }
0x16f3   :  { %3194 = vmatmul.mubr.msk.f32.vlgmr.msra.gmra.mrb[22].mxu0 %vm2702_vm7, %v2691_v30 }
0x17c6   :  { %v2776_v34 = vpop.f32.mrb[22].mxu0 }
0x17c7   :  { %v2777_v37 = vadd.f32 %v2882_v32, %v2776_v34  ;;  %v3195_v38 = vpop.f32.mrb[23].mxu0 }
0x17c9   :  { %2781 = vst.msk [vmem:[%s2819_s2] sm:$0x3] %vm2780_vm8, %v2777_v37 }

</bundles_post_ra>
